<compile_context>
chip_gen: v5e
topology: v5e:2x2
jax: 0.10.0
libtpu: 0.0.40
codegen_flags: <defaults>
</compile_context>

<pallas_src>
import functools
import math

import jax
import jax.numpy as jnp
from jax import lax
from jax.experimental import pallas as pl
from jax.experimental.pallas import tpu as pltpu


# ----------------------------- kernel -------------------------------------- #

def _layer_norm(z, gamma, beta, eps=1e-5):
    """LayerNorm over the last axis, computed in float32."""
    mu = jnp.mean(z, axis=-1, keepdims=True)
    var = jnp.mean((z - mu) ** 2, axis=-1, keepdims=True)
    return (z - mu) * lax.rsqrt(var + eps) * gamma + beta


def fused_decoder_kernel(x_ref,
                         wqkv_ref, wo_ref,
                         ln1_g_ref, ln1_b_ref,
                         w1_ref, b1_ref, w2_ref, b2_ref,
                         ln2_g_ref, ln2_b_ref,
                         post_g_ref, post_b_ref,
                         o_ref,
                         h_scratch,
                         *, num_heads, head_dim):
    """One (batch-block, layer) grid step of the whole decoder stack."""
    l = pl.program_id(1)
    n_layers = pl.num_programs(1)

    Bb, S, H = h_scratch.shape
    nh, hd = num_heads, head_dim
    cdt = x_ref.dtype                       # compute dtype (bf16)
    neg_inf = jnp.finfo(jnp.float32).min

    # layer 0: load the embedding block into the resident f32 hidden carry
    @pl.when(l == 0)
    def _():
        h_scratch[...] = x_ref[...].astype(jnp.float32)

    h_in = h_scratch[...]                   # (Bb, S, H) f32 residual stream
    xc = h_in.astype(cdt).reshape(Bb * S, H)

    # --- fused QKV projection: one MXU pass, N = 3H, f32 accumulation -------
    qkv = jnp.dot(xc, wqkv_ref[0], preferred_element_type=jnp.float32)  # (Bb*S, 3H)

    # --- split into per-(batch, head) stacks for batched attention ----------
    def gather_heads(col0):
        parts = [qkv[b * S:(b + 1) * S, col0 + h * hd: col0 + (h + 1) * hd]
                 for b in range(Bb) for h in range(nh)]
        return jnp.stack(parts, axis=0).astype(cdt)      # (Bb*nh, S, hd)

    qh = gather_heads(0)
    kh = gather_heads(H)
    vh = gather_heads(2 * H)

    # --- attention: one batched score einsum, one softmax, one ctx einsum ---
    scores = jnp.einsum('bqd,bkd->bqk', qh, kh,
                        preferred_element_type=jnp.float32)  # (Bb*nh, S, S)
    scores = scores * (1.0 / math.sqrt(hd))

    row = lax.broadcasted_iota(jnp.int32, (S, S), 0)
    col = lax.broadcasted_iota(jnp.int32, (S, S), 1)
    scores = jnp.where((col <= row)[None, :, :], scores, neg_inf)   # causal

    scores = scores - jnp.max(scores, axis=-1, keepdims=True)
    p = jnp.exp(scores)
    p = p * pl.reciprocal(jnp.sum(p, axis=-1, keepdims=True), approx=True)

    ctx = jnp.einsum('bqk,bkd->bqd', p.astype(cdt), vh,
                     preferred_element_type=jnp.float32)     # (Bb*nh, S, hd)

    # --- merge heads in vregs (lane concat), one K=H Wo matmul --------------
    merged = jnp.concatenate(
        [jnp.concatenate([ctx[b * nh + h] for h in range(nh)], axis=-1)
         for b in range(Bb)], axis=0).astype(cdt)            # (Bb*S, H)
    attn = jnp.dot(merged, wo_ref[0],
                   preferred_element_type=jnp.float32).reshape(Bb, S, H)

    # --- AddNorm 1 ------------------------------------------------------------
    h1 = _layer_norm(attn + h_in, ln1_g_ref[0], ln1_b_ref[0])

    # --- MLP (Linear -> ReLU -> Linear), rows folded into M -------------------
    z = jnp.dot(h1.astype(cdt).reshape(Bb * S, H), w1_ref[0],
                preferred_element_type=jnp.float32)
    z = jnp.maximum(z + b1_ref[0], 0.0)
    z = jnp.dot(z.astype(cdt), w2_ref[0],
                preferred_element_type=jnp.float32)
    z = z.reshape(Bb, S, H) + b2_ref[0]

    # --- AddNorm 2 -------------------------------------------------------------
    out = _layer_norm(z + h1, ln2_g_ref[0], ln2_b_ref[0])

    # carry the f32 hidden state to the next layer (resident in VMEM)
    h_scratch[...] = out

    # final post-LN fused into the last layer; output written once per b-block
    @pl.when(l == n_layers - 1)
    def _():
        o_ref[...] = _layer_norm(out, post_g_ref[...],
                                 post_b_ref[...]).astype(o_ref.dtype)


# ----------------------------- wrapper -------------------------------------- #

def transformer_decoder_forward(tokens, params, config, block_b=None):
    """Full forward pass (no cache). tokens: (B, S) int32. Returns (B, S, H)."""
    B, S = tokens.shape
    H = config["num_hiddens"]
    I = config["num_mlp_intermediate"]
    nh = config["num_heads"]
    L = config["num_layers"]
    adt = params["wqkv"].dtype

    assert H % nh == 0
    assert S % 8 == 0, "TODO(synk): pad ragged sequence lengths to sublane (8)"

    # glue: embedding gather + sinusoidal position embedding (plain JAX)
    hidden = jnp.take(params["embedding"], tokens, axis=0).astype(jnp.float32)
    hidden = hidden + params["pos_table"][:S][None, :, :]
    hidden = hidden.astype(adt)

    if block_b is None:
        block_b = B if B <= 8 else max(d for d in (8, 4, 2, 1) if B % d == 0)
    assert B % block_b == 0
    nb = B // block_b

    kernel = functools.partial(fused_decoder_kernel,
                               num_heads=nh, head_dim=H // nh)

    def layer_spec(shape):
        # stacked (L, ...) weight: one layer per grid step, prefetched over l
        nd = len(shape)
        return pl.BlockSpec((1,) + tuple(shape[1:]),
                            lambda b, l: (l,) + (0,) * (nd - 1))

    def const_spec(shape):
        # fetched once (index_map constant over the whole grid)
        nd = len(shape)
        return pl.BlockSpec(tuple(shape), lambda b, l: (0,) * nd)

    operands = (hidden,
                params["wqkv"], params["wo"],
                params["ln1_g"], params["ln1_b"],
                params["w1"], params["b1"], params["w2"], params["b2"],
                params["ln2_g"], params["ln2_b"],
                params["post_ln_g"], params["post_ln_b"])

    in_specs = ([pl.BlockSpec((block_b, S, H), lambda b, l: (b, 0, 0))]
                + [layer_spec(op.shape) for op in operands[1:11]]
                + [const_spec(op.shape) for op in operands[11:]])

    # --- VMEM budget: double-buffered per-layer weights (layer prefetch),
    #     x/out blocks, f32 residual scratch, f32 intermediates, headroom ----
    itm = jnp.dtype(adt).itemsize
    layer_w_bytes = sum(int(op.size // L) * op.dtype.itemsize
                        for op in operands[1:11])
    const_bytes = sum(int(op.size) * op.dtype.itemsize for op in operands[11:])
    xo_bytes = 2 * block_b * S * H * itm                    # x block + out block
    scratch_bytes = block_b * S * H * 4                     # f32 hidden carry
    f32_inter = 4 * (block_b * S * 3 * H                    # fused qkv
                     + 3 * block_b * S * H                  # qh/kh/vh stacks
                     + 2 * block_b * nh * S * S             # scores + probs
                     + block_b * S * H                      # ctx
                     + 3 * block_b * S * H                  # attn, h1, out
                     + block_b * S * I)                     # MLP intermediate
    est = (2 * layer_w_bytes + 2 * xo_bytes + const_bytes
           + scratch_bytes + f32_inter + (8 << 20))
    try:
        phys_vmem = int(pltpu.get_tpu_info().vmem_capacity_bytes)
    except Exception:
        phys_vmem = 64 << 20                                # conservative (v7x)
    cap = (phys_vmem * 3) // 4                              # leave compiler headroom
    vmem_limit = int(min(cap, max(32 << 20, est)))

    return pl.pallas_call(
        kernel,
        out_shape=jax.ShapeDtypeStruct((B, S, H), adt),
        grid_spec=pltpu.PrefetchScalarGridSpec(
            num_scalar_prefetch=0,
            grid=(nb, L),                    # layer axis innermost (serial)
            in_specs=in_specs,
            out_specs=pl.BlockSpec((block_b, S, H), lambda b, l: (b, 0, 0)),
            scratch_shapes=[pltpu.VMEM((block_b, S, H), jnp.float32)],
        ),
        compiler_params=pltpu.CompilerParams(
            dimension_semantics=("parallel", "arbitrary"),
            vmem_limit_bytes=vmem_limit),
    )(*operands)


# ----------------------------- param init ----------------------------------- #

def init_params(key, config, param_dtype=jnp.bfloat16):
    """Weights stacked over layers: matmul weights bf16, LN/bias in f32."""
    V = config["vocab_size"]
    H = config["num_hiddens"]
    I = config["num_mlp_intermediate"]
    L = config["num_layers"]
    P = config["max_position_embeddings"]

    def nrm(k, shape, scale=0.02):
        return (scale * jax.random.normal(k, shape, jnp.float32)
                ).astype(param_dtype)

    keys = jax.random.split(key, 7)
    params = {"embedding": nrm(keys[0], (V, H))}

    # sinusoidal position table (matches PositionEmbedding), kept in f32
    pos = jnp.arange(P, dtype=jnp.float32)[:, None]
    div = jnp.power(10000.0, jnp.arange(0, H, 2, dtype=jnp.float32) / H)
    ang = pos / div                                            # (P, H//2)
    ptab = jnp.zeros((P, H), jnp.float32)
    ptab = ptab.at[:, 0::2].set(jnp.sin(ang)).at[:, 1::2].set(jnp.cos(ang))
    params["pos_table"] = ptab

    # stacked per-layer weights, (in, out) layout; QKV fused on the out axis
    params["wqkv"] = nrm(keys[1], (L, H, 3 * H))
    params["wo"] = nrm(keys[2], (L, H, H))
    params["w1"] = nrm(keys[3], (L, H, I))
    params["b1"] = 0.02 * jax.random.normal(keys[4], (L, 1, I), jnp.float32)
    params["w2"] = nrm(keys[5], (L, I, H))
    params["b2"] = 0.02 * jax.random.normal(keys[6], (L, 1, H), jnp.float32)
    params["ln1_g"] = jnp.ones((L, 1, H), jnp.float32)
    params["ln1_b"] = jnp.zeros((L, 1, H), jnp.float32)
    params["ln2_g"] = jnp.ones((L, 1, H), jnp.float32)
    params["ln2_b"] = jnp.zeros((L, 1, H), jnp.float32)
    params["post_ln_g"] = jnp.ones((1, H), jnp.float32)
    params["post_ln_b"] = jnp.zeros((1, H), jnp.float32)
    return params


# ----------------------------- main ------------------------------------------ #

if __name__ == "__main__":
    config = dict(
        vocab_size=100,
        num_hiddens=128,            # lane-dense last dim (multiple of 128)
        num_heads=4,                # head_dim = 32
        num_layers=2,
        num_mlp_intermediate=256,
        max_position_embeddings=64,
        dropout=0.0,                # eval mode: dropout is identity
    )
    B, S = 2, 16

    key = jax.random.PRNGKey(0)
    k_tok, k_par = jax.random.split(key)
    tokens = jax.random.randint(k_tok, (B, S), 0, config["vocab_size"],
                                dtype=jnp.int32)
    params = init_params(k_par, config)

    fwd = jax.jit(lambda t, p: transformer_decoder_forward(t, p, config))
    out = jax.block_until_ready(fwd(tokens, params))

    assert out.shape == (B, S, config["num_hiddens"])
    assert bool(jnp.all(jnp.isfinite(out.astype(jnp.float32))))
    print("KERNEL_OK")
</pallas_src>

<mosaic_0001>
module attributes {stable_mosaic.version = 11 : i64} {
  func.func @fused_decoder_kernel(%arg0: i32, %arg1: i32, %arg2: memref<2x16x128xbf16, #tpu.memory_space<vmem>>, %arg3: memref<1x128x384xbf16, #tpu.memory_space<vmem>>, %arg4: memref<1x128x128xbf16, #tpu.memory_space<vmem>>, %arg5: memref<1x1x128xf32, #tpu.memory_space<vmem>>, %arg6: memref<1x1x128xf32, #tpu.memory_space<vmem>>, %arg7: memref<1x128x256xbf16, #tpu.memory_space<vmem>>, %arg8: memref<1x1x256xf32, #tpu.memory_space<vmem>>, %arg9: memref<1x256x128xbf16, #tpu.memory_space<vmem>>, %arg10: memref<1x1x128xf32, #tpu.memory_space<vmem>>, %arg11: memref<1x1x128xf32, #tpu.memory_space<vmem>>, %arg12: memref<1x1x128xf32, #tpu.memory_space<vmem>>, %arg13: memref<1x128xf32, #tpu.memory_space<vmem>>, %arg14: memref<1x128xf32, #tpu.memory_space<vmem>>, %arg15: memref<2x16x128xbf16, #tpu.memory_space<vmem>>, %arg16: memref<2x16x128xf32, #tpu.memory_space<vmem>>) attributes {dimension_semantics = [#tpu.dimension_semantics<parallel>, #tpu.dimension_semantics<arbitrary>], iteration_bounds = array<i64: 1, 2>, scalar_prefetch = 0 : i64, scratch_operands = 1 : i64, tpu.core_type = #tpu.core_type<tc>, window_params = [{transform_indices = @transform_0, window_bounds = array<i64: 2, 16, 128>}, {transform_indices = @transform_1, window_bounds = array<i64: 1, 128, 384>}, {transform_indices = @transform_2, window_bounds = array<i64: 1, 128, 128>}, {transform_indices = @transform_3, window_bounds = array<i64: 1, 1, 128>}, {transform_indices = @transform_4, window_bounds = array<i64: 1, 1, 128>}, {transform_indices = @transform_5, window_bounds = array<i64: 1, 128, 256>}, {transform_indices = @transform_6, window_bounds = array<i64: 1, 1, 256>}, {transform_indices = @transform_7, window_bounds = array<i64: 1, 256, 128>}, {transform_indices = @transform_8, window_bounds = array<i64: 1, 1, 128>}, {transform_indices = @transform_9, window_bounds = array<i64: 1, 1, 128>}, {transform_indices = @transform_10, window_bounds = array<i64: 1, 1, 128>}, {pipeline_mode = #tpu.pipeline_mode<synchronous>, transform_indices = @transform_11, window_bounds = array<i64: 1, 128>}, {pipeline_mode = #tpu.pipeline_mode<synchronous>, transform_indices = @transform_12, window_bounds = array<i64: 1, 128>}, {transform_indices = @transform_13, window_bounds = array<i64: 2, 16, 128>}]} {
    %c0_i32 = arith.constant 0 : i32
    %0 = arith.cmpi eq, %arg1, %c0_i32 : i32
    %1 = arith.extui %0 : i1 to i32
    %c0_i32_0 = arith.constant 0 : i32
    %2 = arith.cmpi ne, %1, %c0_i32_0 : i32
    scf.if %2 {
      %c0_57 = arith.constant 0 : index
      %c0_58 = arith.constant 0 : index
      %c0_59 = arith.constant 0 : index
      %193 = vector.load %arg2[%c0_57, %c0_58, %c0_59] : memref<2x16x128xbf16, #tpu.memory_space<vmem>>, vector<2x16x128xbf16>
      %194 = arith.extf %193 : vector<2x16x128xbf16> to vector<2x16x128xf32>
      %c0_60 = arith.constant 0 : index
      %c0_61 = arith.constant 0 : index
      %c0_62 = arith.constant 0 : index
      %195 = vector.load %arg16[%c0_60, %c0_61, %c0_62] : memref<2x16x128xf32, #tpu.memory_space<vmem>>, vector<2x16x128xf32>
      tpu.vector_store %arg16[%c0_60, %c0_61, %c0_62], %194 {strides = array<i32>} : memref<2x16x128xf32, #tpu.memory_space<vmem>>, vector<2x16x128xf32>,
    } else {
    }
    %c0 = arith.constant 0 : index
    %c0_1 = arith.constant 0 : index
    %c0_2 = arith.constant 0 : index
    %3 = vector.load %arg16[%c0, %c0_1, %c0_2] : memref<2x16x128xf32, #tpu.memory_space<vmem>>, vector<2x16x128xf32>
    %4 = arith.truncf %3 : vector<2x16x128xf32> to vector<2x16x128xbf16>
    %5 = vector.shape_cast %4 : vector<2x16x128xbf16> to vector<32x128xbf16>
    %c0_3 = arith.constant 0 : index
    %c0_4 = arith.constant 0 : index
    %c0_5 = arith.constant 0 : index
    %6 = vector.load %arg3[%c0_3, %c0_4, %c0_5] : memref<1x128x384xbf16, #tpu.memory_space<vmem>>, vector<1x128x384xbf16>
    %7 = vector.shape_cast %6 : vector<1x128x384xbf16> to vector<128x384xbf16>
    %cst = arith.constant dense<0.000000e+00> : vector<32x384xf32>
    %8 = tpu.matmul %5, %7, %cst {dimension_numbers = #tpu.dot_dimension_numbers<[1], [0], [0], [1], [0, 0, 1, 1], [], []>} : vector<32x128xbf16>, vector<128x384xbf16>, vector<32x384xf32> -> vector<32x384xf32>
    %9 = vector.extract_strided_slice %8 {offsets = [0, 0], sizes = [16, 32], strides = [1, 1]} : vector<32x384xf32> to vector<16x32xf32>
    %10 = vector.extract_strided_slice %8 {offsets = [0, 32], sizes = [16, 32], strides = [1, 1]} : vector<32x384xf32> to vector<16x32xf32>
    %11 = vector.extract_strided_slice %8 {offsets = [0, 64], sizes = [16, 32], strides = [1, 1]} : vector<32x384xf32> to vector<16x32xf32>
    %12 = vector.extract_strided_slice %8 {offsets = [0, 96], sizes = [16, 32], strides = [1, 1]} : vector<32x384xf32> to vector<16x32xf32>
    %13 = vector.extract_strided_slice %8 {offsets = [16, 0], sizes = [16, 32], strides = [1, 1]} : vector<32x384xf32> to vector<16x32xf32>
    %14 = vector.extract_strided_slice %8 {offsets = [16, 32], sizes = [16, 32], strides = [1, 1]} : vector<32x384xf32> to vector<16x32xf32>
    %15 = vector.extract_strided_slice %8 {offsets = [16, 64], sizes = [16, 32], strides = [1, 1]} : vector<32x384xf32> to vector<16x32xf32>
    %16 = vector.extract_strided_slice %8 {offsets = [16, 96], sizes = [16, 32], strides = [1, 1]} : vector<32x384xf32> to vector<16x32xf32>
    %17 = vector.shape_cast %9 : vector<16x32xf32> to vector<1x16x32xf32>
    %18 = vector.shape_cast %10 : vector<16x32xf32> to vector<1x16x32xf32>
    %19 = vector.shape_cast %11 : vector<16x32xf32> to vector<1x16x32xf32>
    %20 = vector.shape_cast %12 : vector<16x32xf32> to vector<1x16x32xf32>
    %21 = vector.shape_cast %13 : vector<16x32xf32> to vector<1x16x32xf32>
    %22 = vector.shape_cast %14 : vector<16x32xf32> to vector<1x16x32xf32>
    %23 = vector.shape_cast %15 : vector<16x32xf32> to vector<1x16x32xf32>
    %24 = vector.shape_cast %16 : vector<16x32xf32> to vector<1x16x32xf32>
    %25 = tpu.concatenate %17, %18, %19, %20, %21, %22, %23, %24 in 0 : vector<1x16x32xf32>, vector<1x16x32xf32>, vector<1x16x32xf32>, vector<1x16x32xf32>, vector<1x16x32xf32>, vector<1x16x32xf32>, vector<1x16x32xf32>, vector<1x16x32xf32> -> vector<8x16x32xf32>
    %26 = arith.truncf %25 : vector<8x16x32xf32> to vector<8x16x32xbf16>
    %27 = vector.extract_strided_slice %8 {offsets = [0, 128], sizes = [16, 32], strides = [1, 1]} : vector<32x384xf32> to vector<16x32xf32>
    %28 = vector.extract_strided_slice %8 {offsets = [0, 160], sizes = [16, 32], strides = [1, 1]} : vector<32x384xf32> to vector<16x32xf32>
    %29 = vector.extract_strided_slice %8 {offsets = [0, 192], sizes = [16, 32], strides = [1, 1]} : vector<32x384xf32> to vector<16x32xf32>
    %30 = vector.extract_strided_slice %8 {offsets = [0, 224], sizes = [16, 32], strides = [1, 1]} : vector<32x384xf32> to vector<16x32xf32>
    %31 = vector.extract_strided_slice %8 {offsets = [16, 128], sizes = [16, 32], strides = [1, 1]} : vector<32x384xf32> to vector<16x32xf32>
    %32 = vector.extract_strided_slice %8 {offsets = [16, 160], sizes = [16, 32], strides = [1, 1]} : vector<32x384xf32> to vector<16x32xf32>
    %33 = vector.extract_strided_slice %8 {offsets = [16, 192], sizes = [16, 32], strides = [1, 1]} : vector<32x384xf32> to vector<16x32xf32>
    %34 = vector.extract_strided_slice %8 {offsets = [16, 224], sizes = [16, 32], strides = [1, 1]} : vector<32x384xf32> to vector<16x32xf32>
    %35 = vector.shape_cast %27 : vector<16x32xf32> to vector<1x16x32xf32>
    %36 = vector.shape_cast %28 : vector<16x32xf32> to vector<1x16x32xf32>
    %37 = vector.shape_cast %29 : vector<16x32xf32> to vector<1x16x32xf32>
    %38 = vector.shape_cast %30 : vector<16x32xf32> to vector<1x16x32xf32>
    %39 = vector.shape_cast %31 : vector<16x32xf32> to vector<1x16x32xf32>
    %40 = vector.shape_cast %32 : vector<16x32xf32> to vector<1x16x32xf32>
    %41 = vector.shape_cast %33 : vector<16x32xf32> to vector<1x16x32xf32>
    %42 = vector.shape_cast %34 : vector<16x32xf32> to vector<1x16x32xf32>
    %43 = tpu.concatenate %35, %36, %37, %38, %39, %40, %41, %42 in 0 : vector<1x16x32xf32>, vector<1x16x32xf32>, vector<1x16x32xf32>, vector<1x16x32xf32>, vector<1x16x32xf32>, vector<1x16x32xf32>, vector<1x16x32xf32>, vector<1x16x32xf32> -> vector<8x16x32xf32>
    %44 = arith.truncf %43 : vector<8x16x32xf32> to vector<8x16x32xbf16>
    %45 = vector.extract_strided_slice %8 {offsets = [0, 256], sizes = [16, 32], strides = [1, 1]} : vector<32x384xf32> to vector<16x32xf32>
    %46 = vector.extract_strided_slice %8 {offsets = [0, 288], sizes = [16, 32], strides = [1, 1]} : vector<32x384xf32> to vector<16x32xf32>
    %47 = vector.extract_strided_slice %8 {offsets = [0, 320], sizes = [16, 32], strides = [1, 1]} : vector<32x384xf32> to vector<16x32xf32>
    %48 = vector.extract_strided_slice %8 {offsets = [0, 352], sizes = [16, 32], strides = [1, 1]} : vector<32x384xf32> to vector<16x32xf32>
    %49 = vector.extract_strided_slice %8 {offsets = [16, 256], sizes = [16, 32], strides = [1, 1]} : vector<32x384xf32> to vector<16x32xf32>
    %50 = vector.extract_strided_slice %8 {offsets = [16, 288], sizes = [16, 32], strides = [1, 1]} : vector<32x384xf32> to vector<16x32xf32>
    %51 = vector.extract_strided_slice %8 {offsets = [16, 320], sizes = [16, 32], strides = [1, 1]} : vector<32x384xf32> to vector<16x32xf32>
    %52 = vector.extract_strided_slice %8 {offsets = [16, 352], sizes = [16, 32], strides = [1, 1]} : vector<32x384xf32> to vector<16x32xf32>
    %53 = vector.shape_cast %45 : vector<16x32xf32> to vector<1x16x32xf32>
    %54 = vector.shape_cast %46 : vector<16x32xf32> to vector<1x16x32xf32>
    %55 = vector.shape_cast %47 : vector<16x32xf32> to vector<1x16x32xf32>
    %56 = vector.shape_cast %48 : vector<16x32xf32> to vector<1x16x32xf32>
    %57 = vector.shape_cast %49 : vector<16x32xf32> to vector<1x16x32xf32>
    %58 = vector.shape_cast %50 : vector<16x32xf32> to vector<1x16x32xf32>
    %59 = vector.shape_cast %51 : vector<16x32xf32> to vector<1x16x32xf32>
    %60 = vector.shape_cast %52 : vector<16x32xf32> to vector<1x16x32xf32>
    %61 = tpu.concatenate %53, %54, %55, %56, %57, %58, %59, %60 in 0 : vector<1x16x32xf32>, vector<1x16x32xf32>, vector<1x16x32xf32>, vector<1x16x32xf32>, vector<1x16x32xf32>, vector<1x16x32xf32>, vector<1x16x32xf32>, vector<1x16x32xf32> -> vector<8x16x32xf32>
    %62 = arith.truncf %61 : vector<8x16x32xf32> to vector<8x16x32xbf16>
    "tpu.trace_start"() <{level = 10 : i32, message = "bqd,bkd->bqk"}> : () -> ()
    %cst_6 = arith.constant dense<0.000000e+00> : vector<8x16x16xf32>
    %63 = tpu.matmul %26, %44, %cst_6 {dimension_numbers = #tpu.dot_dimension_numbers<[2], [2], [1], [1], [0, 0, 0, 1, 1, 1], [0], [0]>} : vector<8x16x32xbf16>, vector<8x16x32xbf16>, vector<8x16x16xf32> -> vector<8x16x16xf32>
    "tpu.trace_stop"() : () -> ()
    %cst_7 = arith.constant 0.176776692 : f32
    %64 = vector.broadcast %cst_7 : f32 to vector<8x16x16xf32>
    %65 = arith.mulf %63, %64 : vector<8x16x16xf32>
    %66 = tpu.iota {dimensions = array<i32: 0>} : vector<16x16xi32>
    %67 = tpu.iota {dimensions = array<i32: 1>} : vector<16x16xi32>
    %68 = arith.cmpi sle, %67, %66 : vector<16x16xi32>
    %69 = vector.shape_cast %68 : vector<16x16xi1> to vector<1x16x16xi1>
    %cst_8 = arith.constant -3.40282347E+38 : f32
    %70 = vector.shape_cast %69 : vector<1x16x16xi1> to vector<1x16x16xi1>
    %71 = vector.broadcast %70 : vector<1x16x16xi1> to vector<8x16x16xi1>
    %72 = vector.broadcast %cst_8 : f32 to vector<8x16x16xf32>
    %73 = arith.select %71, %65, %72 : vector<8x16x16xi1>, vector<8x16x16xf32>
    %cst_9 = arith.constant dense<0xFF800000> : vector<8x16xf32>
    %74 = vector.multi_reduction <maximumf>, %73, %cst_9 [2] : vector<8x16x16xf32> to vector<8x16xf32>
    %75 = vector.shape_cast %74 : vector<8x16xf32> to vector<8x16x1xf32>
    %76 = vector.broadcast %75 : vector<8x16x1xf32> to vector<8x16x16xf32>
    %77 = arith.subf %73, %76 : vector<8x16x16xf32>
    %78 = math.exp %77 : vector<8x16x16xf32>
    %cst_10 = arith.constant dense<0.000000e+00> : vector<8x16xf32>
    %79 = vector.multi_reduction <add>, %78, %cst_10 [2] : vector<8x16x16xf32> to vector<8x16xf32>
    %80 = vector.shape_cast %79 : vector<8x16xf32> to vector<8x16x1xf32>
    %81 = tpu.reciprocal %80 {approx = true} : vector<8x16x1xf32> -> vector<8x16x1xf32>
    %82 = vector.broadcast %81 : vector<8x16x1xf32> to vector<8x16x16xf32>
    %83 = arith.mulf %78, %82 : vector<8x16x16xf32>
    %84 = arith.truncf %83 : vector<8x16x16xf32> to vector<8x16x16xbf16>
    "tpu.trace_start"() <{level = 10 : i32, message = "bqk,bkd->bqd"}> : () -> ()
    %cst_11 = arith.constant dense<0.000000e+00> : vector<8x16x32xf32>
    %85 = tpu.matmul %84, %62, %cst_11 {dimension_numbers = #tpu.dot_dimension_numbers<[2], [1], [1], [2], [0, 0, 0, 1, 1, 2], [0], [0]>} : vector<8x16x16xbf16>, vector<8x16x32xbf16>, vector<8x16x32xf32> -> vector<8x16x32xf32>
    "tpu.trace_stop"() : () -> ()
    %86 = vector.extract_strided_slice %85 {offsets = [0, 0, 0], sizes = [1, 16, 32], strides = [1, 1, 1]} : vector<8x16x32xf32> to vector<1x16x32xf32>
    %87 = vector.shape_cast %86 : vector<1x16x32xf32> to vector<16x32xf32>
    %88 = vector.extract_strided_slice %85 {offsets = [1, 0, 0], sizes = [1, 16, 32], strides = [1, 1, 1]} : vector<8x16x32xf32> to vector<1x16x32xf32>
    %89 = vector.shape_cast %88 : vector<1x16x32xf32> to vector<16x32xf32>
    %90 = vector.extract_strided_slice %85 {offsets = [2, 0, 0], sizes = [1, 16, 32], strides = [1, 1, 1]} : vector<8x16x32xf32> to vector<1x16x32xf32>
    %91 = vector.shape_cast %90 : vector<1x16x32xf32> to vector<16x32xf32>
    %92 = vector.extract_strided_slice %85 {offsets = [3, 0, 0], sizes = [1, 16, 32], strides = [1, 1, 1]} : vector<8x16x32xf32> to vector<1x16x32xf32>
    %93 = vector.shape_cast %92 : vector<1x16x32xf32> to vector<16x32xf32>
    %94 = tpu.concatenate %87, %89, %91, %93 in 1 : vector<16x32xf32>, vector<16x32xf32>, vector<16x32xf32>, vector<16x32xf32> -> vector<16x128xf32>
    %95 = vector.extract_strided_slice %85 {offsets = [4, 0, 0], sizes = [1, 16, 32], strides = [1, 1, 1]} : vector<8x16x32xf32> to vector<1x16x32xf32>
    %96 = vector.shape_cast %95 : vector<1x16x32xf32> to vector<16x32xf32>
    %97 = vector.extract_strided_slice %85 {offsets = [5, 0, 0], sizes = [1, 16, 32], strides = [1, 1, 1]} : vector<8x16x32xf32> to vector<1x16x32xf32>
    %98 = vector.shape_cast %97 : vector<1x16x32xf32> to vector<16x32xf32>
    %99 = vector.extract_strided_slice %85 {offsets = [6, 0, 0], sizes = [1, 16, 32], strides = [1, 1, 1]} : vector<8x16x32xf32> to vector<1x16x32xf32>
    %100 = vector.shape_cast %99 : vector<1x16x32xf32> to vector<16x32xf32>
    %101 = vector.extract_strided_slice %85 {offsets = [7, 0, 0], sizes = [1, 16, 32], strides = [1, 1, 1]} : vector<8x16x32xf32> to vector<1x16x32xf32>
    %102 = vector.shape_cast %101 : vector<1x16x32xf32> to vector<16x32xf32>
    %103 = tpu.concatenate %96, %98, %100, %102 in 1 : vector<16x32xf32>, vector<16x32xf32>, vector<16x32xf32>, vector<16x32xf32> -> vector<16x128xf32>
    %104 = tpu.concatenate %94, %103 in 0 : vector<16x128xf32>, vector<16x128xf32> -> vector<32x128xf32>
    %105 = arith.truncf %104 : vector<32x128xf32> to vector<32x128xbf16>
    %c0_12 = arith.constant 0 : index
    %c0_13 = arith.constant 0 : index
    %c0_14 = arith.constant 0 : index
    %106 = vector.load %arg4[%c0_12, %c0_13, %c0_14] : memref<1x128x128xbf16, #tpu.memory_space<vmem>>, vector<1x128x128xbf16>
    %107 = vector.shape_cast %106 : vector<1x128x128xbf16> to vector<128x128xbf16>
    %cst_15 = arith.constant dense<0.000000e+00> : vector<32x128xf32>
    %108 = tpu.matmul %105, %107, %cst_15 {dimension_numbers = #tpu.dot_dimension_numbers<[1], [0], [0], [1], [0, 0, 1, 1], [], []>} : vector<32x128xbf16>, vector<128x128xbf16>, vector<32x128xf32> -> vector<32x128xf32>
    %109 = vector.shape_cast %108 : vector<32x128xf32> to vector<2x16x128xf32>
    %110 = arith.addf %109, %3 : vector<2x16x128xf32>
    %c0_16 = arith.constant 0 : index
    %c0_17 = arith.constant 0 : index
    %c0_18 = arith.constant 0 : index
    %111 = vector.load %arg5[%c0_16, %c0_17, %c0_18] : memref<1x1x128xf32, #tpu.memory_space<vmem>>, vector<1x1x128xf32>
    %112 = vector.shape_cast %111 : vector<1x1x128xf32> to vector<1x128xf32>
    %c0_19 = arith.constant 0 : index
    %c0_20 = arith.constant 0 : index
    %c0_21 = arith.constant 0 : index
    %113 = vector.load %arg6[%c0_19, %c0_20, %c0_21] : memref<1x1x128xf32, #tpu.memory_space<vmem>>, vector<1x1x128xf32>
    %114 = vector.shape_cast %113 : vector<1x1x128xf32> to vector<1x128xf32>
    %cst_22 = arith.constant dense<0.000000e+00> : vector<2x16xf32>
    %115 = vector.multi_reduction <add>, %110, %cst_22 [2] : vector<2x16x128xf32> to vector<2x16xf32>
    %116 = vector.shape_cast %115 : vector<2x16xf32> to vector<2x16x1xf32>
    %cst_23 = arith.constant 1.280000e+02 : f32
    %117 = vector.broadcast %cst_23 : f32 to vector<2x16x1xf32>
    %118 = arith.divf %116, %117 : vector<2x16x1xf32>
    %119 = vector.broadcast %118 : vector<2x16x1xf32> to vector<2x16x128xf32>
    %120 = arith.subf %110, %119 : vector<2x16x128xf32>
    %121 = arith.mulf %120, %120 : vector<2x16x128xf32>
    %cst_24 = arith.constant dense<0.000000e+00> : vector<2x16xf32>
    %122 = vector.multi_reduction <add>, %121, %cst_24 [2] : vector<2x16x128xf32> to vector<2x16xf32>
    %123 = vector.shape_cast %122 : vector<2x16xf32> to vector<2x16x1xf32>
    %cst_25 = arith.constant 1.280000e+02 : f32
    %124 = vector.broadcast %cst_25 : f32 to vector<2x16x1xf32>
    %125 = arith.divf %123, %124 : vector<2x16x1xf32>
    %126 = vector.broadcast %118 : vector<2x16x1xf32> to vector<2x16x128xf32>
    %127 = arith.subf %110, %126 : vector<2x16x128xf32>
    %cst_26 = arith.constant 9.99999974E-6 : f32
    %128 = vector.broadcast %cst_26 : f32 to vector<2x16x1xf32>
    %129 = arith.addf %125, %128 : vector<2x16x1xf32>
    %130 = math.rsqrt %129 : vector<2x16x1xf32>
    %131 = vector.broadcast %130 : vector<2x16x1xf32> to vector<2x16x128xf32>
    %132 = arith.mulf %127, %131 : vector<2x16x128xf32>
    %133 = vector.shape_cast %112 : vector<1x128xf32> to vector<1x1x128xf32>
    %134 = vector.broadcast %133 : vector<1x1x128xf32> to vector<2x16x128xf32>
    %135 = arith.mulf %132, %134 : vector<2x16x128xf32>
    %136 = vector.shape_cast %114 : vector<1x128xf32> to vector<1x1x128xf32>
    %137 = vector.broadcast %136 : vector<1x1x128xf32> to vector<2x16x128xf32>
    %138 = arith.addf %135, %137 : vector<2x16x128xf32>
    %139 = arith.truncf %138 : vector<2x16x128xf32> to vector<2x16x128xbf16>
    %140 = vector.shape_cast %139 : vector<2x16x128xbf16> to vector<32x128xbf16>
    %c0_27 = arith.constant 0 : index
    %c0_28 = arith.constant 0 : index
    %c0_29 = arith.constant 0 : index
    %141 = vector.load %arg7[%c0_27, %c0_28, %c0_29] : memref<1x128x256xbf16, #tpu.memory_space<vmem>>, vector<1x128x256xbf16>
    %142 = vector.shape_cast %141 : vector<1x128x256xbf16> to vector<128x256xbf16>
    %cst_30 = arith.constant dense<0.000000e+00> : vector<32x256xf32>
    %143 = tpu.matmul %140, %142, %cst_30 {dimension_numbers = #tpu.dot_dimension_numbers<[1], [0], [0], [1], [0, 0, 1, 1], [], []>} : vector<32x128xbf16>, vector<128x256xbf16>, vector<32x256xf32> -> vector<32x256xf32>
    %c0_31 = arith.constant 0 : index
    %c0_32 = arith.constant 0 : index
    %c0_33 = arith.constant 0 : index
    %144 = vector.load %arg8[%c0_31, %c0_32, %c0_33] : memref<1x1x256xf32, #tpu.memory_space<vmem>>, vector<1x1x256xf32>
    %145 = vector.shape_cast %144 : vector<1x1x256xf32> to vector<1x256xf32>
    %146 = vector.broadcast %145 : vector<1x256xf32> to vector<32x256xf32>
    %147 = arith.addf %143, %146 : vector<32x256xf32>
    %cst_34 = arith.constant 0.000000e+00 : f32
    %148 = vector.broadcast %cst_34 : f32 to vector<32x256xf32>
    %149 = arith.maximumf %147, %148 : vector<32x256xf32>
    %150 = arith.truncf %149 : vector<32x256xf32> to vector<32x256xbf16>
    %c0_35 = arith.constant 0 : index
    %c0_36 = arith.constant 0 : index
    %c0_37 = arith.constant 0 : index
    %151 = vector.load %arg9[%c0_35, %c0_36, %c0_37] : memref<1x256x128xbf16, #tpu.memory_space<vmem>>, vector<1x256x128xbf16>
    %152 = vector.shape_cast %151 : vector<1x256x128xbf16> to vector<256x128xbf16>
    %cst_38 = arith.constant dense<0.000000e+00> : vector<32x128xf32>
    %153 = tpu.matmul %150, %152, %cst_38 {dimension_numbers = #tpu.dot_dimension_numbers<[1], [0], [0], [1], [0, 0, 1, 1], [], []>} : vector<32x256xbf16>, vector<256x128xbf16>, vector<32x128xf32> -> vector<32x128xf32>
    %154 = vector.shape_cast %153 : vector<32x128xf32> to vector<2x16x128xf32>
    %c0_39 = arith.constant 0 : index
    %c0_40 = arith.constant 0 : index
    %c0_41 = arith.constant 0 : index
    %155 = vector.load %arg10[%c0_39, %c0_40, %c0_41] : memref<1x1x128xf32, #tpu.memory_space<vmem>>, vector<1x1x128xf32>
    %156 = vector.shape_cast %155 : vector<1x1x128xf32> to vector<1x128xf32>
    %157 = vector.shape_cast %156 : vector<1x128xf32> to vector<1x1x128xf32>
    %158 = vector.broadcast %157 : vector<1x1x128xf32> to vector<2x16x128xf32>
    %159 = arith.addf %154, %158 : vector<2x16x128xf32>
    %160 = arith.addf %159, %138 : vector<2x16x128xf32>
    %c0_42 = arith.constant 0 : index
    %c0_43 = arith.constant 0 : index
    %c0_44 = arith.constant 0 : index
    %161 = vector.load %arg11[%c0_42, %c0_43, %c0_44] : memref<1x1x128xf32, #tpu.memory_space<vmem>>, vector<1x1x128xf32>
    %162 = vector.shape_cast %161 : vector<1x1x128xf32> to vector<1x128xf32>
    %c0_45 = arith.constant 0 : index
    %c0_46 = arith.constant 0 : index
    %c0_47 = arith.constant 0 : index
    %163 = vector.load %arg12[%c0_45, %c0_46, %c0_47] : memref<1x1x128xf32, #tpu.memory_space<vmem>>, vector<1x1x128xf32>
    %164 = vector.shape_cast %163 : vector<1x1x128xf32> to vector<1x128xf32>
    %cst_48 = arith.constant dense<0.000000e+00> : vector<2x16xf32>
    %165 = vector.multi_reduction <add>, %160, %cst_48 [2] : vector<2x16x128xf32> to vector<2x16xf32>
    %166 = vector.shape_cast %165 : vector<2x16xf32> to vector<2x16x1xf32>
    %cst_49 = arith.constant 1.280000e+02 : f32
    %167 = vector.broadcast %cst_49 : f32 to vector<2x16x1xf32>
    %168 = arith.divf %166, %167 : vector<2x16x1xf32>
    %169 = vector.broadcast %168 : vector<2x16x1xf32> to vector<2x16x128xf32>
    %170 = arith.subf %160, %169 : vector<2x16x128xf32>
    %171 = arith.mulf %170, %170 : vector<2x16x128xf32>
    %cst_50 = arith.constant dense<0.000000e+00> : vector<2x16xf32>
    %172 = vector.multi_reduction <add>, %171, %cst_50 [2] : vector<2x16x128xf32> to vector<2x16xf32>
    %173 = vector.shape_cast %172 : vector<2x16xf32> to vector<2x16x1xf32>
    %cst_51 = arith.constant 1.280000e+02 : f32
    %174 = vector.broadcast %cst_51 : f32 to vector<2x16x1xf32>
    %175 = arith.divf %173, %174 : vector<2x16x1xf32>
    %176 = vector.broadcast %168 : vector<2x16x1xf32> to vector<2x16x128xf32>
    %177 = arith.subf %160, %176 : vector<2x16x128xf32>
    %cst_52 = arith.constant 9.99999974E-6 : f32
    %178 = vector.broadcast %cst_52 : f32 to vector<2x16x1xf32>
    %179 = arith.addf %175, %178 : vector<2x16x1xf32>
    %180 = math.rsqrt %179 : vector<2x16x1xf32>
    %181 = vector.broadcast %180 : vector<2x16x1xf32> to vector<2x16x128xf32>
    %182 = arith.mulf %177, %181 : vector<2x16x128xf32>
    %183 = vector.shape_cast %162 : vector<1x128xf32> to vector<1x1x128xf32>
    %184 = vector.broadcast %183 : vector<1x1x128xf32> to vector<2x16x128xf32>
    %185 = arith.mulf %182, %184 : vector<2x16x128xf32>
    %186 = vector.shape_cast %164 : vector<1x128xf32> to vector<1x1x128xf32>
    %187 = vector.broadcast %186 : vector<1x1x128xf32> to vector<2x16x128xf32>
    %188 = arith.addf %185, %187 : vector<2x16x128xf32>
    %c0_53 = arith.constant 0 : index
    %c0_54 = arith.constant 0 : index
    %c0_55 = arith.constant 0 : index
    %189 = vector.load %arg16[%c0_53, %c0_54, %c0_55] : memref<2x16x128xf32, #tpu.memory_space<vmem>>, vector<2x16x128xf32>
    tpu.vector_store %arg16[%c0_53, %c0_54, %c0_55], %188 {strides = array<i32>} : memref<2x16x128xf32, #tpu.memory_space<vmem>>, vector<2x16x128xf32>,
    %c1_i32 = arith.constant 1 : i32
    %190 = arith.cmpi eq, %arg1, %c1_i32 : i32
    %191 = arith.extui %190 : i1 to i32
    %c0_i32_56 = arith.constant 0 : i32
    %192 = arith.cmpi ne, %191, %c0_i32_56 : i32
    scf.if %192 {
      %c0_57 = arith.constant 0 : index
      %c0_58 = arith.constant 0 : index
      %193 = vector.load %arg13[%c0_57, %c0_58] : memref<1x128xf32, #tpu.memory_space<vmem>>, vector<1x128xf32>
      %c0_59 = arith.constant 0 : index
      %c0_60 = arith.constant 0 : index
      %194 = vector.load %arg14[%c0_59, %c0_60] : memref<1x128xf32, #tpu.memory_space<vmem>>, vector<1x128xf32>
      %cst_61 = arith.constant dense<0.000000e+00> : vector<2x16xf32>
      %195 = vector.multi_reduction <add>, %188, %cst_61 [2] : vector<2x16x128xf32> to vector<2x16xf32>
      %196 = vector.shape_cast %195 : vector<2x16xf32> to vector<2x16x1xf32>
      %cst_62 = arith.constant 1.280000e+02 : f32
      %197 = vector.broadcast %cst_62 : f32 to vector<2x16x1xf32>
      %198 = arith.divf %196, %197 : vector<2x16x1xf32>
      %199 = vector.broadcast %198 : vector<2x16x1xf32> to vector<2x16x128xf32>
      %200 = arith.subf %188, %199 : vector<2x16x128xf32>
      %201 = arith.mulf %200, %200 : vector<2x16x128xf32>
      %cst_63 = arith.constant dense<0.000000e+00> : vector<2x16xf32>
      %202 = vector.multi_reduction <add>, %201, %cst_63 [2] : vector<2x16x128xf32> to vector<2x16xf32>
      %203 = vector.shape_cast %202 : vector<2x16xf32> to vector<2x16x1xf32>
      %cst_64 = arith.constant 1.280000e+02 : f32
      %204 = vector.broadcast %cst_64 : f32 to vector<2x16x1xf32>
      %205 = arith.divf %203, %204 : vector<2x16x1xf32>
      %206 = vector.broadcast %198 : vector<2x16x1xf32> to vector<2x16x128xf32>
      %207 = arith.subf %188, %206 : vector<2x16x128xf32>
      %cst_65 = arith.constant 9.99999974E-6 : f32
      %208 = vector.broadcast %cst_65 : f32 to vector<2x16x1xf32>
      %209 = arith.addf %205, %208 : vector<2x16x1xf32>
      %210 = math.rsqrt %209 : vector<2x16x1xf32>
      %211 = vector.broadcast %210 : vector<2x16x1xf32> to vector<2x16x128xf32>
      %212 = arith.mulf %207, %211 : vector<2x16x128xf32>
      %213 = vector.shape_cast %193 : vector<1x128xf32> to vector<1x1x128xf32>
      %214 = vector.broadcast %213 : vector<1x1x128xf32> to vector<2x16x128xf32>
      %215 = arith.mulf %212, %214 : vector<2x16x128xf32>
      %216 = vector.shape_cast %194 : vector<1x128xf32> to vector<1x1x128xf32>
      %217 = vector.broadcast %216 : vector<1x1x128xf32> to vector<2x16x128xf32>
      %218 = arith.addf %215, %217 : vector<2x16x128xf32>
      %219 = arith.truncf %218 : vector<2x16x128xf32> to vector<2x16x128xbf16>
      %c0_66 = arith.constant 0 : index
      %c0_67 = arith.constant 0 : index
      %c0_68 = arith.constant 0 : index
      %220 = vector.load %arg15[%c0_66, %c0_67, %c0_68] : memref<2x16x128xbf16, #tpu.memory_space<vmem>>, vector<2x16x128xbf16>
      tpu.vector_store %arg15[%c0_66, %c0_67, %c0_68], %219 {strides = array<i32>} : memref<2x16x128xbf16, #tpu.memory_space<vmem>>, vector<2x16x128xbf16>,
    } else {
    }
    return
  }
  func.func @transform_0(%arg0: i32, %arg1: i32) -> (i32, i32, i32) {
    %c0_i32 = arith.constant 0 : i32
    %c0_i32_0 = arith.constant 0 : i32
    %c0_i32_1 = arith.constant 0 : i32
    return %arg0, %c0_i32, %c0_i32_0 : i32, i32, i32
  }
  func.func @transform_1(%arg0: i32, %arg1: i32) -> (i32, i32, i32) {
    %c0_i32 = arith.constant 0 : i32
    %c0_i32_0 = arith.constant 0 : i32
    %c0_i32_1 = arith.constant 0 : i32
    return %arg1, %c0_i32, %c0_i32_0 : i32, i32, i32
  }
  func.func @transform_2(%arg0: i32, %arg1: i32) -> (i32, i32, i32) {
    %c0_i32 = arith.constant 0 : i32
    %c0_i32_0 = arith.constant 0 : i32
    %c0_i32_1 = arith.constant 0 : i32
    return %arg1, %c0_i32, %c0_i32_0 : i32, i32, i32
  }
  func.func @transform_3(%arg0: i32, %arg1: i32) -> (i32, i32, i32) {
    %c0_i32 = arith.constant 0 : i32
    %c0_i32_0 = arith.constant 0 : i32
    %c0_i32_1 = arith.constant 0 : i32
    return %arg1, %c0_i32, %c0_i32_0 : i32, i32, i32
  }
  func.func @transform_4(%arg0: i32, %arg1: i32) -> (i32, i32, i32) {
    %c0_i32 = arith.constant 0 : i32
    %c0_i32_0 = arith.constant 0 : i32
    %c0_i32_1 = arith.constant 0 : i32
    return %arg1, %c0_i32, %c0_i32_0 : i32, i32, i32
  }
  func.func @transform_5(%arg0: i32, %arg1: i32) -> (i32, i32, i32) {
    %c0_i32 = arith.constant 0 : i32
    %c0_i32_0 = arith.constant 0 : i32
    %c0_i32_1 = arith.constant 0 : i32
    return %arg1, %c0_i32, %c0_i32_0 : i32, i32, i32
  }
  func.func @transform_6(%arg0: i32, %arg1: i32) -> (i32, i32, i32) {
    %c0_i32 = arith.constant 0 : i32
    %c0_i32_0 = arith.constant 0 : i32
    %c0_i32_1 = arith.constant 0 : i32
    return %arg1, %c0_i32, %c0_i32_0 : i32, i32, i32
  }
  func.func @transform_7(%arg0: i32, %arg1: i32) -> (i32, i32, i32) {
    %c0_i32 = arith.constant 0 : i32
    %c0_i32_0 = arith.constant 0 : i32
    %c0_i32_1 = arith.constant 0 : i32
    return %arg1, %c0_i32, %c0_i32_0 : i32, i32, i32
  }
  func.func @transform_8(%arg0: i32, %arg1: i32) -> (i32, i32, i32) {
    %c0_i32 = arith.constant 0 : i32
    %c0_i32_0 = arith.constant 0 : i32
    %c0_i32_1 = arith.constant 0 : i32
    return %arg1, %c0_i32, %c0_i32_0 : i32, i32, i32
  }
  func.func @transform_9(%arg0: i32, %arg1: i32) -> (i32, i32, i32) {
    %c0_i32 = arith.constant 0 : i32
    %c0_i32_0 = arith.constant 0 : i32
    %c0_i32_1 = arith.constant 0 : i32
    return %arg1, %c0_i32, %c0_i32_0 : i32, i32, i32
  }
  func.func @transform_10(%arg0: i32, %arg1: i32) -> (i32, i32, i32) {
    %c0_i32 = arith.constant 0 : i32
    %c0_i32_0 = arith.constant 0 : i32
    %c0_i32_1 = arith.constant 0 : i32
    return %arg1, %c0_i32, %c0_i32_0 : i32, i32, i32
  }
  func.func @transform_11(%arg0: i32, %arg1: i32) -> (i32, i32) {
    %c0_i32 = arith.constant 0 : i32
    %c0_i32_0 = arith.constant 0 : i32
    %c0_i32_1 = arith.constant 0 : i32
    return %c0_i32, %c0_i32_0 : i32, i32
  }
  func.func @transform_12(%arg0: i32, %arg1: i32) -> (i32, i32) {
    %c0_i32 = arith.constant 0 : i32
    %c0_i32_0 = arith.constant 0 : i32
    %c0_i32_1 = arith.constant 0 : i32
    return %c0_i32, %c0_i32_0 : i32, i32
  }
  func.func @transform_13(%arg0: i32, %arg1: i32) -> (i32, i32, i32) {
    %c0_i32 = arith.constant 0 : i32
    %c0_i32_0 = arith.constant 0 : i32
    %c0_i32_1 = arith.constant 0 : i32
    return %arg0, %c0_i32, %c0_i32_0 : i32, i32, i32
  }
}

</mosaic_0001>

<bundles_post_ra>
// kernel: _lambda_.1
= control target key start
LH: loop header
LB: loop body
LE: loop exit
PB: predicated region body
PF: predicated region fallthrough
CT: control target
= control target key end

     0   :  { %s4485_s0 = inlined_call_operand.vmem [shape: bf16[2,16,128], index: 0, kind: input, shape index: {}]   ;;  %s4486_s1 = inlined_call_operand.hbm [shape: bf16[2,128,384], index: 1, kind: input, shape index: {}]   ;;  %s4487_s2 = inlined_call_operand.vmem [shape: bf16[2,128,128], index: 2, kind: input, shape index: {}]   ;;  %s4488_s3 = inlined_call_operand.vmem [shape: f32[2,1,128], index: 3, kind: input, shape index: {}]   ;;  %s4489_s4 = inlined_call_operand.vmem [shape: f32[2,1,128], index: 4, kind: input, shape index: {}]   ;;  %s4490_s5 = inlined_call_operand.hbm [shape: bf16[2,128,256], index: 5, kind: input, shape index: {}]   ;;  %s4491_s6 = inlined_call_operand.vmem [shape: f32[2,1,256], index: 6, kind: input, shape index: {}]   ;;  %s4492_s7 = inlined_call_operand.hbm [shape: bf16[2,256,128], index: 7, kind: input, shape index: {}]   ;;  %s4493_s8 = inlined_call_operand.vmem [shape: f32[2,1,128], index: 8, kind: input, shape index: {}]   ;;  %s4494_s9 = inlined_call_operand.vmem [shape: f32[2,1,128], index: 9, kind: input, shape index: {}]   ;;  %s4495_s10 = inlined_call_operand.vmem [shape: f32[2,1,128], index: 10, kind: input, shape index: {}]   ;;  %s4496_s11 = inlined_call_operand.vmem [shape: f32[1,128], index: 11, kind: input, shape index: {}]   ;;  %s4497_s12 = inlined_call_operand.vmem [shape: f32[1,128], index: 12, kind: input, shape index: {}]   ;;  %s4498_s13 = inlined_call_operand.hbm [shape: bf16[2,16,128], index: 13, kind: output, shape index: {}]  }
   0x1   :  { %4503 = sst [smem:[#allocation17_spill]] %s4485_s0 }
   0x2   :  { %4504 = sst [smem:[#allocation18_spill]] %s4486_s1 }
   0x3   :  { %4505 = sst [smem:[#allocation19_spill]] %s4487_s2 }
   0x4   :  { %4506 = sst [smem:[#allocation20_spill]] %s4490_s5 }
   0x5   :  { %4507 = sst [smem:[#allocation21_spill]] %s4492_s7 }
   0x6   :  { %4508 = sst [smem:[#allocation22_spill]] %s4495_s10 }
   0x7   :  { %4509 = sst [smem:[#allocation23_spill]] %s4496_s11 }
   0x8   :  { %4510 = sst [smem:[#allocation24_spill]] %s4497_s12 }
   0x9   :  { %4511 = sst [smem:[#allocation25_spill]] %s4498_s13 }
   0xa   :  { %18 = vsyncpa [#allocation4], 0 }
   0xb   :  { %20 = vsyncpa [#allocation4 + $0x1], 0 }
   0xc   :  { %21 = vsyncpa [#allocation7], 0 }
   0xd   :  { %23 = vsyncpa [#allocation7 + $0x1], 0 }
   0xe   :  { %24 = vsyncpa [#allocation5], 0  ;;  %s3763_s25 = smov 0   ;;  %s3765_s26 = smov 0  }
   0xf   :  { %s3767_s27 = smov 0   ;;  %s3769_s28 = smov 0  }
  0x10   :  { %s3771_s29 = smov 0   ;;  %s3773_s30 = smov 0  }
  0x11 LB: > { %4512 = sst [smem:[#allocation13_spill]] %s3667_s27  ;;  %s3792_s14 = sadd.s32 4294967295, %s3679_s30   ;;  %s3679_s30 = sphi %s3773_s30, %s30_s30   ;;  %s3675_s29 = sphi %s3771_s29, %s4541_s29   ;;  %s3671_s28 = sphi %s3769_s28, %s4540_s28   ;;  %s3667_s27 = sphi %s3767_s27, %s4536_s27   ;;  %s3663_s26 = sphi %s3765_s26, %s4539_s26   ;;  %s3659_s25 = sphi %s3763_s25, %s4538_s25  }
  0x12   : > { %4513 = sst [smem:[#allocation14_spill]] %s3679_s30  ;;  %s39_s15 = sadd.s32 1, %s3675_s29 }
  0x13   : > { %p40_p0 = scmp.ge.s32.totalorder %s39_s15, 2  ;;  %s75_s16 = sadd.s32 1, %s3667_s27 }
  0x14   : > { %p82_p1 = scmp.ne.s32.totalorder %s3667_s27, %s3663_s26  ;;  %p83_p2 = scmp.eq.s32.totalorder %s3679_s30, 0 }
  0x15   : > { %s4543_s15 = smov (%p40_p0, %s39_s15), 0  ;;  %p88_p4 = scmp.ne.s32.totalorder %s3663_s26, %s3659_s25 }
  0x16   : > { %4514 = sst [smem:[#allocation15_spill]] %s4543_s15  ;;  %p84_p3 = por %p83_p2, %p82_p1 }
  0x17   : > { %s72_s17 = ssub.s32 %s3675_s29, %s4543_s15  ;;  %p89_p5 = scmp.eq.s32.totalorder %s3792_s14, 0 }
  0x18   : > { %p73_p6 = scmp.eq.s32.totalorder %s72_s17, 0  ;;  %p3219_p8 = scmp.lt.s32.totalorder %s3679_s30, 2 }
  0x19   : > { %p3805_p7 = por %p89_p5, %p88_p4  ;;  %s3814_s20 = sand.u32 1, %s3667_s27  }
  0x1a   : > { %s3811_s19 = scalar_select %p73_p6, %s3667_s27, %s75_s16  }
  0x1b   : > { %p3816_p9 = pnand %p3219_p8, %p84_p3  ;;  %s472_s22 = sand.u32 1, %s3679_s30  }
  0x1c   : > { %4516 = sst [smem:[#allocation16_spill]] %s3811_s19  ;;  %s2819_s23 = sshll.u32 %s3814_s20, 7 }
  0x1d   : > { %s3109_s24 = sshll.u32 %s3675_s29, 7  ;;  %s4518_s5 = sld [smem:[#allocation20_spill]] }
  0x1e   : > { %s476_s13 = scalar_lea.vmem [#allocation6], %s2819_s23  ;;  %s3826_s27 = scalar_lea.sflag [#allocation7], %s472_s22 }
  0x1f   : > { %s484_s16 = sshll.u32 %s476_s13, 4  ;;  %s3681_s12 = smov 128   ;;  %s485_s16 = int_to_ptr.vmem [resolvable:$true] %s484_s16 }
  0x20   : > { %s3682_s11 = smov 8   ;;  %s4519_s7 = sld [smem:[#allocation21_spill]] }
  0x21   : > { %s505_s17 = scalar_lea.vmem [#allocation8], %s2819_s23  ;;  %p2825_p10 = scmp.ge.s32.totalorder %s3679_s30, 1 }
  0x22   : > { %p539_p11 = scmp.lt.s32.totalorder %s3679_s30, 3  ;;  %s4521_s1 = sld [smem:[#allocation18_spill]] }
  0x23   : > { %s481_s15 = scalar_lea.hbm %s4518_s5, %s3109_s24  ;;  %s513_s5 = sshll.u32 %s505_s17, 4  ;;  %s514_s5 = int_to_ptr.vmem [resolvable:$true] %s513_s5 }
  0x24   : > { %s482_s19 = sshll.u32 %s481_s15, 4  ;;  %p3836_p12 = pnand %p2825_p10, %p539_p11  ;;  %s483_s19 = int_to_ptr.hbm [resolvable:$true] %s482_s19 }
  0x25   : > { %3215 = dma.hbm_to_vmem [thread:$0]  (!%p3816_p9), %s483_s19, 2048, %s485_s16, %s3826_s27, %s3681_s12, %s3681_s12, %s3682_s11  }
  0x26   : > { %s510_s25 = scalar_lea.hbm %s4519_s7, %s3109_s24  ;;  %s3196_s11 = smul.u32 192, %s3814_s20 }
  0x27   : > { %s511_s13 = sshll.u32 %s510_s25, 4  ;;  %s3197_s12 = smul.u32 192, %s3675_s29  ;;  %s512_s13 = int_to_ptr.hbm [resolvable:$true] %s511_s13 }
  0x28   : > { %s434_s22 = scalar_lea.vmem [#allocation3], %s3196_s11  ;;  %s431_s16 = scalar_lea.sflag [#allocation4], %s3814_s20 }
  0x29   : > { %s439_s10 = scalar_lea.hbm %s4521_s1, %s3197_s12  ;;  %s442_s23 = sshll.u32 %s434_s22, 4  ;;  %s443_s23 = int_to_ptr.vmem [resolvable:$true] %s442_s23 }
  0x2a   : > { %s440_s24 = sshll.u32 %s439_s10, 4  ;;  %s3683_s25 = smov 192   ;;  %s441_s24 = int_to_ptr.hbm [resolvable:$true] %s440_s24 }
  0x2b   : > { %s3684_s17 = smov 12   ;;  %s3685_s7 = smov 64  }
  0x2c   : > { %3212 = dma.hbm_to_vmem [thread:$0]  (!%p3816_p9), %s441_s24, 3072, %s443_s23, %s431_s16, %s3683_s25, %s3683_s25, %s3684_s17  }
  0x2d   : > { %s3686_s30 = smov 4   ;;  %543 = sbr.rel (%p3836_p12) target bundleno = 2378 (0x94a), region = 72 }
  0x2e   : > { %3218 = dma.hbm_to_vmem [thread:$0]  (!%p3816_p9), %s512_s13, 2048, %s514_s5, %s3826_s27, %s3685_s7, %s3685_s7, %s3686_s30  }
  0x2f   : > { %s545_s12 = sand.u32 (!%p3836_p12), 1, %s3663_s26  }
  0x30   : > { %s3198_s11 = smul.u32 (!%p3836_p12), 192, %s545_s12  ;;  %s546_s19 = scalar_lea.sflag (!%p3836_p12), [#allocation4], %s545_s12 }
  0x32   : > { %s3854_s0 = scalar_lea.vmem [#allocation3], %s3198_s11 }
  0x33   : > { %3646 = dma.done.wait (%p3805_p7), %s546_s19, 3072  }
  0x34   : > { %3648 = vsyncadd (%p3805_p7), %s546_s19, 4294964224  ;;  %s555_s20 = sand.u32 1, %s3792_s14   ;;  %s2826_s21 = sshll.u32 %s545_s12, 7 }
  0x35   : > { %s556_s5 = scalar_lea.sflag [#allocation7], %s555_s20  ;;  %s3861_s7 = scalar_lea.vmem [#allocation6], %s2826_s21 }
  0x36   : > { %3650 = dma.done.wait (%p3805_p7), %s556_s5, 4096  }
  0x37   : > { %3652 = vsyncadd (%p3805_p7), %s556_s5, 4294963200  ;;  %p655_p13 = scmp.lt.s32.totalorder %s3671_s28, 1  ;;  %s4522_s2 = sld [smem:[#allocation19_spill]] }
  0x38   : > { %s4523_s10 = sld [smem:[#allocation22_spill]]  ;;  %s3903_s24 = scalar_lea.vmem [#allocation8], %s2826_s21 }
  0x39   : > { %s3869_s27 = scalar_select %p655_p13, %s3671_s28, 1 }
  0x3a   : > { %p2831_p0 = scmp.ne.s32.totalorder %s3671_s28, 0 }
  0x3b   : > { %s3111_s30 = sshll.u32 %s3869_s27, 6  ;;  %s665_s25 = scalar_lea.vmem %s4489_s4, %s3869_s27 }
  0x3c   : > { %s2830_s17 = sshll.u32 %s3869_s27, 1  ;;  %s672_s19 = scalar_lea.vmem %s4493_s8, %s3869_s27 }
  0x3d   : > { %s3879_s23 = scalar_lea.vmem %s4522_s2, %s3111_s30  ;;  %s3893_s1 = scalar_lea.vmem %s4491_s6, %s2830_s17 }
  0x3e   : > { %s675_s22 = scalar_lea.vmem %s4494_s9, %s3869_s27  ;;  %s678_s2 = scalar_lea.vmem %s4523_s10, %s3869_s27 }
  0x3f   : > { %684 = sbr.rel (%p2831_p0) target bundleno = 76 (0x4c), region = 88  ;;  %s4524_s11 = sld [smem:[#allocation17_spill]] (!%p2831_p0) }
  0x45   : > { %v3177_v0 = vld [vmem:[%s4524_s11] sm:$0xff]   ;;  %v3194_v1 = vld [vmem:[%s4524_s11 + $0x8] sm:$0xff]  }
  0x46   : > { %v3178_v2 = vunpack.c.l.bf16 %v3177_v0  ;;  %v3179_v3 = vunpack.c.h.bf16 %v3177_v0  ;;  %v3182_v4 = vunpack.c.l.bf16 %v3194_v1  ;;  %v3183_v5 = vunpack.c.h.bf16 %v3194_v1 }
  0x48   : > { %693 = vst [vmem:[#allocation2 + $0x10] sm:$0xff] %v3178_v2 }
  0x49   : > { %694 = vst [vmem:[#allocation2] sm:$0xff] %v3179_v3 }
  0x4a   : > { %695 = vst [vmem:[#allocation2 + $0x18] sm:$0xff] %v3182_v4 }
  0x4b   : > { %696 = vst [vmem:[#allocation2 + $0x8] sm:$0xff] %v3183_v5 }
  0x4c PF: > { %v2918_v6 = vld [vmem:[%s3854_s0 + $0xa8] sm:$0xf]  ;;  %v3134_v7 = vld [vmem:[%s3854_s0 + $0xb0] sm:$0xf0]  ;;  %v3133_v8 = vld [vmem:[%s3854_s0 + $0xac] sm:$0xf]  ;;  %s4529_s5 = scalar_lea.vmem %s4488_s3, %s3869_s27 }
  0x4d   : > { %v2919_v9 = vor.u32 %v3134_v7, %v2918_v6  ;;  %v2920_v10 = vld [vmem:[%s3854_s0 + $0xb4] sm:$0xf0]  ;;  %v2906_v11 = vld [vmem:[%s3854_s0 + $0x90] sm:$0xf]  ;;  %v3131_v12 = vld [vmem:[%s3854_s0 + $0x98] sm:$0xf0] }
  0x4e   : > { %v2923_v13 = vor.u32 %v3133_v8, %v2920_v10  ;;  %v3130_v14 = vld [vmem:[%s3854_s0 + $0x94] sm:$0xf]  ;;  %v2908_v15 = vld [vmem:[%s3854_s0 + $0x9c] sm:$0xf0]  ;;  %v2907_v16 = vor.u32 %v3131_v12, %v2906_v11  ;;  %v2894_v18 = vld [vmem:[%s3854_s0 + $0x78] sm:$0xf] }
  0x4f   : > { %877 = vmatpush.bf16.msra.mxu0 %v2919_v9  ;;  %v2911_v17 = vor.u32 %v3130_v14, %v2908_v15  ;;  %v3128_v19 = vld [vmem:[%s3854_s0 + $0x80] sm:$0xf0]  ;;  %v3127_v20 = vld [vmem:[%s3854_s0 + $0x7c] sm:$0xf]  ;;  %v2896_v21 = vld [vmem:[%s3854_s0 + $0x84] sm:$0xf0] }
  0x50   : > { %896 = vmatpush.bf16.msra.mxu1 %v2923_v13  ;;  %v2895_v22 = vor.u32 %v3128_v19, %v2894_v18  ;;  %v2899_v23 = vor.u32 %v3127_v20, %v2896_v21  ;;  %v2882_v24 = vld [vmem:[%s3854_s0 + $0x60] sm:$0xf]  ;;  %v3125_v25 = vld [vmem:[%s3854_s0 + $0x68] sm:$0xf0]  ;;  %v3124_v26 = vld [vmem:[%s3854_s0 + $0x64] sm:$0xf] }
  0x51   : > { %v2884_v27 = vld [vmem:[%s3854_s0 + $0x6c] sm:$0xf0]  ;;  %v2883_v28 = vor.u32 %v3125_v25, %v2882_v24  ;;  %v2870_v29 = vld [vmem:[%s3854_s0 + $0x48] sm:$0xf]  ;;  %v3122_v30 = vld [vmem:[%s3854_s0 + $0x50] sm:$0xf0] }
  0x52   : > { %v3121_v31 = vld [vmem:[%s3854_s0 + $0x4c] sm:$0xf]  ;;  %v2887_v32 = vor.u32 %v3124_v26, %v2884_v27  ;;  %v2872_v33 = vld [vmem:[%s3854_s0 + $0x54] sm:$0xf0]  ;;  %v2871_v34 = vor.u32 %v3122_v30, %v2870_v29  ;;  %v2858_v36 = vld [vmem:[%s3854_s0 + $0x30] sm:$0xf] }
  0x53   : > { %878 = vmatpush.bf16.msra.mxu0 %v2907_v16  ;;  %v2875_v35 = vor.u32 %v3121_v31, %v2872_v33  ;;  %v3119_v37 = vld [vmem:[%s3854_s0 + $0x38] sm:$0xf0]  ;;  %v3118_v38 = vld [vmem:[%s3854_s0 + $0x34] sm:$0xf]  ;;  %v2860_v39 = vld [vmem:[%s3854_s0 + $0x3c] sm:$0xf0] }
  0x54   : > { %897 = vmatpush.bf16.msra.mxu1 %v2911_v17  ;;  %v697_v40 = vld [vmem:[#allocation2 + $0x10] sm:$0xff]  ;;  %v698_v41 = vld [vmem:[#allocation2] sm:$0xff]  ;;  %v2859_v42 = vor.u32 %v3119_v37, %v2858_v36  ;;  %v3135_v44 = vld [vmem:[%s3854_s0 + $0xb8] sm:$0xf0]  ;;  %v2863_v46 = vor.u32 %v3118_v38, %v2860_v39  ;;  %s3687_s21 = smov 32   ;;  %s3688_s10 = smov 64  }
  0x55   : > { %v2926_v43 = vld [vmem:[%s3854_s0 + $0xb0] sm:$0xf]  ;;  %v2914_v45 = vld [vmem:[%s3854_s0 + $0x98] sm:$0xf]  ;;  %v3116_v48 = vld [vmem:[%s3854_s0 + $0x20] sm:$0xf0]  ;;  %v701_v53 = vpack.c.bf16 %v697_v40, %v697_v40  ;;  %v702_v54 = vpack.c.bf16 %v698_v41, %v698_v41 }
  0x56   : > { %v2846_v47 = vld [vmem:[%s3854_s0 + $0x18] sm:$0xf]  ;;  %v2927_v49 = vor.u32 %v3135_v44, %v2926_v43  ;;  %v3132_v50 = vld [vmem:[%s3854_s0 + $0xa0] sm:$0xf0]  ;;  %v3115_v51 = vld [vmem:[%s3854_s0 + $0x1c] sm:$0xf] }
  0x57   : > { %879 = vmatpush.bf16.msra.mxu0 %v2895_v22  ;;  %v2848_v52 = vld [vmem:[%s3854_s0 + $0x24] sm:$0xf0]  ;;  %v2915_v55 = vor.u32 %v3132_v50, %v2914_v45  ;;  %v2847_v56 = vor.u32 %v3116_v48, %v2846_v47  ;;  %v2902_v57 = vld [vmem:[%s3854_s0 + $0x80] sm:$0xf]  ;;  %v3129_v58 = vld [vmem:[%s3854_s0 + $0x88] sm:$0xf0]  ;;  %v741_v0 = vunpack.c.l.b16 %v701_v53  ;;  %v742_v1 = vunpack.c.l.b16 %v702_v54 }
  0x58   : > { %898 = vmatpush.bf16.msra.mxu1 %v2899_v23  ;;  %915 = vmatpush.bf16.msra.mxu2 %v2927_v49  ;;  %v2851_v59 = vor.u32 %v3115_v51, %v2848_v52  ;;  %v2834_v60 = vld [vmem:[%s3854_s0] sm:$0xf]  ;;  %v3113_v61 = vld [vmem:[%s3854_s0 + $0x8] sm:$0xf0]  ;;  %v3112_v62 = vld [vmem:[%s3854_s0 + $0x4] sm:$0xf]  ;;  %v2903_v2 = vor.u32 %v3129_v58, %v2902_v57 }
  0x59   : > { %v2836_v63 = vld [vmem:[%s3854_s0 + $0xc] sm:$0xf0]  ;;  %v2835_v3 = vor.u32 %v3113_v61, %v2834_v60  ;;  %v2890_v4 = vld [vmem:[%s3854_s0 + $0x68] sm:$0xf]  ;;  %v3126_v5 = vld [vmem:[%s3854_s0 + $0x70] sm:$0xf0]  ;;  %v745_v7 = vpack.c.b16 %v742_v1, %v741_v0 }
  0x5a   : > { %v2839_v6 = vor.u32 %v3112_v62, %v2836_v63  ;;  %v2891_v8 = vor.u32 %v3126_v5, %v2890_v4  ;;  %v2878_v9 = vld [vmem:[%s3854_s0 + $0x50] sm:$0xf]  ;;  %v3123_v10 = vld [vmem:[%s3854_s0 + $0x58] sm:$0xf0]  ;;  %v2866_v12 = vld [vmem:[%s3854_s0 + $0x38] sm:$0xf] }
  0x5b   : > { %880 = vmatpush.bf16.msra.mxu0 %v2883_v28  ;;  %v2879_v11 = vor.u32 %v3123_v10, %v2878_v9  ;;  %v3120_v13 = vld [vmem:[%s3854_s0 + $0x40] sm:$0xf0]  ;;  %v699_v14 = vld [vmem:[#allocation2 + $0x18] sm:$0xff]  ;;  %v700_v15 = vld [vmem:[#allocation2 + $0x8] sm:$0xff]  ;;  %vm1112_vm0 = vcmask 261120   ;;  %vm1386_vm2 = vcmask 130048  }
  0x5c   : > { %899 = vmatpush.bf16.msra.mxu1 %v2887_v32  ;;  %916 = vmatpush.bf16.msra.mxu2 %v2915_v55  ;;  %v2867_v16 = vor.u32 %v3120_v13, %v2866_v12  ;;  %v703_v17 = vpack.c.bf16 %v699_v14, %v699_v14  ;;  %v704_v18 = vpack.c.bf16 %v700_v15, %v700_v15  ;;  %v2854_v19 = vld [vmem:[%s3854_s0 + $0x20] sm:$0xf]  ;;  %v3117_v20 = vld [vmem:[%s3854_s0 + $0x28] sm:$0xf0]  ;;  %v2842_v24 = vld [vmem:[%s3854_s0 + $0x8] sm:$0xf] }
  0x5d   : > { %v2855_v21 = vor.u32 %v3117_v20, %v2854_v19  ;;  %v3114_v25 = vld [vmem:[%s3854_s0 + $0x10] sm:$0xf0]  ;;  %s3689_s0 = smov 96   ;;  %vm1829_vm4 = vcmask 523264   ;;  %vm1832_vm5 = vcmask 785408   ;;  %p3104_p1 = scmp.ne.s32.totalorder %s3671_s28, 1 }
  0x5e   : > { %v743_v22 = vunpack.c.l.b16 %v703_v17  ;;  %v744_v23 = vunpack.c.l.b16 %v704_v18  ;;  %v2843_v26 = vor.u32 %v3114_v25, %v2842_v24  ;;  %s4531_s27 = sld [smem:[#allocation23_spill]] (!%p3104_p1) }
  0x5f   : > { %881 = vmatpush.bf16.msra.mxu0 %v2871_v34  ;;  %s4532_s20 = sld [smem:[#allocation24_spill]] (!%p3104_p1) }
  0x60   : > { %900 = vmatpush.bf16.msra.mxu1 %v2875_v35  ;;  %917 = vmatpush.bf16.msra.mxu2 %v2903_v2  ;;  %v746_v27 = vpack.c.b16 %v744_v23, %v743_v22 }
  0x63   : > { %882 = vmatpush.bf16.msra.mxu0 %v2859_v42 }
  0x64   : > { %901 = vmatpush.bf16.msra.mxu1 %v2863_v46  ;;  %918 = vmatpush.bf16.msra.mxu2 %v2891_v8 }
  0x67   : > { %883 = vmatpush.bf16.msra.mxu0 %v2847_v56 }
  0x68   : > { %902 = vmatpush.bf16.msra.mxu1 %v2851_v59  ;;  %919 = vmatpush.bf16.msra.mxu2 %v2879_v11 }
  0x6b   : > { %884 = vmatpush.bf16.msra.mxu0 %v2835_v3 }
  0x6c   : > { %903 = vmatpush.bf16.msra.mxu1 %v2839_v6  ;;  %920 = vmatpush.bf16.msra.mxu2 %v2867_v16 }
  0x6e   : > { %885 = vmatmul.bf16.vlgmr.msra.gmra.mxu0 %v745_v7 }
  0x6f   : > { %904 = vmatmul.bf16.vlgmr.msra.gmra.mxu1 %v745_v7 }
  0x70   : > { %921 = vmatpush.bf16.msra.mxu2 %v2855_v21 }
  0x74   : > { %922 = vmatpush.bf16.msra.mxu2 %v2843_v26 }
  0x77   : > { %923 = vmatmul.bf16.vlgmr.msra.gmra.mxu2 %v745_v7 }
  0x7e   : > { %890 = vmatmul.bf16.gmra.mxu0 %v746_v27 }
  0x7f   : > { %909 = vmatmul.bf16.gmra.mxu1 %v746_v27 }
  0x87   : > { %928 = vmatmul.bf16.gmra.mxu2 %v746_v27 }
  0xeb   : > { %v886_v28 = vpop.f32.mrf.mxu0 }
  0xec   : > { %v905_v29 = vpop.f32.mrf.mxu1  ;;  %v974_v37 = vpack.c.bf16 %v886_v28, %v886_v28 }
  0xed   : > { %v1030_v31 = vpack.c.bf16 %v905_v29, %v905_v29 }
  0xee   : > { %v1104_v44 = vunpack.c.l.b16 %v974_v37 }
  0xef   : > { %v1109_v35 = vunpack.c.l.b16 %v1030_v31 }
  0xf3   : > { %v888_v30 = vpop.f32.mrf.mxu0 }
  0xf4   : > { %v907_v32 = vpop.f32.mrf.mxu1  ;;  %v975_v38 = vpack.c.bf16 %v888_v30, %v888_v30  ;;  %v3307_v43 = vpack.i.bf16 %v888_v30, %v886_v28 }
  0xf5   : > { %v3302_v33 = vpack.i.bf16 %v907_v32, %v905_v29  ;;  %v1031_v34 = vpack.c.bf16 %v907_v32, %v907_v32 }
  0xf6   : > { %v1105_v45 = vunpack.c.l.b16 %v975_v38 }
  0xf7   : > { %3303 = vrot.lane.b32.xlu2 %v3302_v33, %s3687_s21  ;;  %3293 = vrot.lane.b32.xlu1 %v3302_v33, %s3688_s10  ;;  %v1110_v36 = vunpack.c.l.b16 %v1031_v34 }
  0xf8   : > { %3283 = vrot.lane.b32.xlu0 %v3302_v33, %s3689_s0  ;;  %v1106_v46 = vpack.c.b16 %v1105_v45, %v1104_v44 }
  0xf9   : > { %v1111_v39 = vpack.c.b16 %v1110_v36, %v1109_v35 }
  0xfa   : > { %v3976_v62 = vpop.f32.mrf.mxu2 }
  0xfb   : > { %v1117_v40 = vsel %vm1112_vm0, %v1111_v39, 0  ;;  %v891_v41 = vpop.f32.mrf.mxu0 }
  0xfc   : > { %v910_v42 = vpop.f32.mrf.mxu1  ;;  %1126 = vmatpush.bf16.xpose.msra.mxu3 %v1117_v40  ;;  %v982_v53 = vpack.c.bf16 %v891_v41, %v891_v41 }
  0xfd   : > { %v1038_v47 = vpack.c.bf16 %v910_v42, %v910_v42 }
  0xfe   : > { %v1225_v58 = vunpack.c.l.b16 %v982_v53 }
  0xff   : > { %3308 = vrot.lane.b32.xlu2 %v3307_v43, %s3687_s21  ;;  %3298 = vrot.lane.b32.xlu1 %v3307_v43, %s3688_s10  ;;  %v1230_v54 = vunpack.c.l.b16 %v1038_v47 }
 0x100   : > { %3288 = vrot.lane.b32.xlu0 %v3307_v43, %s3689_s0 }
 0x102   : > { %v3978_v63 = vpop.f32.mrf.mxu2 }
 0x103   : > { %2928 = vmatmul.msk.bf16.vlgmr.msra.gmra.mxu3 %vm1112_vm0, %v1106_v46  ;;  %v893_v48 = vpop.f32.mrf.mxu0  ;;  %v3982_v0 = vpack.i.bf16 %v3978_v63, %v3976_v62 }
 0x104   : > { %v912_v49 = vpop.f32.mrf.mxu1  ;;  %v3322_v50 = vpack.i.bf16 %v893_v48, %v891_v41  ;;  %v983_v56 = vpack.c.bf16 %v893_v48, %v893_v48 }
 0x105   : > { %v3317_v51 = vpack.i.bf16 %v912_v49, %v910_v42  ;;  %v1039_v52 = vpack.c.bf16 %v912_v49, %v912_v49 }
 0x106   : > { %v1226_v60 = vunpack.c.l.b16 %v983_v56 }
 0x107   : > { %3318 = vrot.lane.b32.xlu1 %v3317_v51, %s3687_s21  ;;  %v1231_v55 = vunpack.c.l.b16 %v1039_v52  ;;  %3323 = vrot.lane.b32.xlu2 %v3322_v50, %s3688_s10 }
 0x108   : > { %3313 = vrot.lane.b32.xlu0 %v3317_v51, %s3688_s10  ;;  %v1227_v61 = vpack.c.b16 %v1226_v60, %v1225_v58 }
 0x109   : > { %v1232_v57 = vpack.c.b16 %v1231_v55, %v1230_v54 }
 0x10b   : > { %v1237_v59 = vsel %vm1112_vm0, %v1232_v57, 0 }
 0x10c   : > { %1246 = vmatpush.bf16.xpose.msrb.mxu1 %v1237_v59 }
 0x10f   : > { %3333 = vrot.lane.b32.xlu1 %v3317_v51, %s3689_s0  ;;  %3338 = vrot.lane.b32.xlu2 %v3322_v50, %s3689_s0  ;;  %v1359_v51 = vlaneseq }
 0x110   : > { %3328 = vrot.lane.b32.xlu0 %v3322_v50, %s3687_s21 }
 0x113   : > { %2932 = vmatmul.msk.bf16.vlgmr.msrb.gmra.mxu1 %vm1112_vm0, %v1227_v61 }
 0x117   : > { %3348 = vrot.lane.b32.xlu2 %v3982_v0, %s3687_s21  ;;  %3343 = vrot.lane.b32.xlu1 %v3982_v0, %s3688_s10 }
 0x151   : > { %v3304_v1 = vpop.permute.xlu2 %3303 }
 0x152   : > { %v3306_v3 = vunpack.i.h.bf16 %v3304_v1  ;;  %v3305_v4 = vunpack.i.l.bf16 %v3304_v1 }
 0x154   : > { %v1037_v14 = vpack.c.bf16 %v3306_v3, %v3306_v3  ;;  %v1036_v15 = vpack.c.bf16 %v3305_v4, %v3305_v4  ;;  %v1360_v4 = vshrl.u32 %v1359_v51, 7 }
 0x156   : > { %v1201_v24 = vunpack.c.l.b16 %v1037_v14  ;;  %v1200_v25 = vunpack.c.l.b16 %v1036_v15 }
 0x158   : > { %v1202_v33 = vpack.c.b16 %v1201_v24, %v1200_v25 }
 0x159   : > { %v3986_v20 = vpop.permute.xlu2 %3308 }
 0x15a   : > { %v1207_v40 = vsel %vm1112_vm0, %v1202_v33, 0 }
 0x161   : > { %v3324_v36 = vpop.permute.xlu2 %3323 }
 0x162   : > { %v3326_v45 = vunpack.i.h.bf16 %v3324_v36  ;;  %v3325_v46 = vunpack.i.l.bf16 %v3324_v36 }
 0x164   : > { %v987_v56 = vpack.c.bf16 %v3326_v45, %v3326_v45  ;;  %v986_v57 = vpack.c.bf16 %v3325_v46, %v3325_v46 }
 0x169   : > { %v3294_v2 = vpop.permute.xlu1 %3293  ;;  %v3339_v1 = vpop.permute.xlu2 %3338 }
 0x16a   : > { %v3296_v5 = vunpack.i.h.bf16 %v3294_v2  ;;  %v3295_v6 = vunpack.i.l.bf16 %v3294_v2  ;;  %v3284_v7 = vpop.permute.xlu0 %3283  ;;  %v3341_v15 = vunpack.i.h.bf16 %v3339_v1 }
 0x16b   : > { %v3286_v8 = vunpack.i.h.bf16 %v3284_v7  ;;  %v3285_v9 = vunpack.i.l.bf16 %v3284_v7 }
 0x16c   : > { %v1035_v10 = vpack.c.bf16 %v3296_v5, %v3296_v5  ;;  %v1034_v11 = vpack.c.bf16 %v3295_v6, %v3295_v6  ;;  %v1363_v5 = vand.u32 127, %v1359_v51 }
 0x16d   : > { %v1033_v12 = vpack.c.bf16 %v3286_v8, %v3286_v8  ;;  %v1032_v13 = vpack.c.bf16 %v3285_v9, %v3285_v9  ;;  %v1286_v9 = vunpack.c.l.b16 %v987_v56 }
 0x16e   : > { %v1171_v16 = vunpack.c.l.b16 %v1035_v10  ;;  %v1170_v17 = vunpack.c.l.b16 %v1034_v11  ;;  %v1285_v10 = vunpack.c.l.b16 %v986_v57  ;;  %vm3993_vm1 = vcmp.le.s32.totalorder %v1363_v5, %v1360_v4 }
 0x16f   : > { %v1141_v18 = vunpack.c.l.b16 %v1033_v12  ;;  %v1140_v19 = vunpack.c.l.b16 %v1032_v13 }
 0x170   : > { %v1172_v21 = vpack.c.b16 %v1171_v16, %v1170_v17  ;;  %v3340_v16 = vunpack.i.l.bf16 %v3339_v1  ;;  %v1287_v24 = vpack.c.b16 %v1286_v9, %v1285_v10 }
 0x171   : > { %v3299_v22 = vpop.permute.xlu1 %3298  ;;  %v1142_v23 = vpack.c.b16 %v1141_v18, %v1140_v19 }
 0x172   : > { %v3289_v26 = vpop.permute.xlu0 %3288  ;;  %v1177_v27 = vsel %vm1112_vm0, %v1172_v21, 0  ;;  %v3301_v47 = vunpack.i.h.bf16 %v3299_v22  ;;  %v3300_v48 = vunpack.i.l.bf16 %v3299_v22 }
 0x173   : > { %v3291_v28 = vunpack.i.h.bf16 %v3289_v26  ;;  %v3290_v29 = vunpack.i.l.bf16 %v3289_v26  ;;  %v1147_v30 = vsel %vm1112_vm0, %v1142_v23, 0 }
 0x174   : > { %1156 = vmatpush.bf16.xpose.msrb.mxu3 %v1147_v30  ;;  %v979_v58 = vpack.c.bf16 %v3301_v47, %v3301_v47  ;;  %v978_v59 = vpack.c.bf16 %v3300_v48, %v3300_v48 }
 0x175   : > { %v977_v31 = vpack.c.bf16 %v3291_v28, %v3291_v28  ;;  %v976_v32 = vpack.c.bf16 %v3290_v29, %v3290_v29  ;;  %v984_v28 = vpack.c.bf16 %v3340_v16, %v3340_v16  ;;  %v4040_v16 = vpop.f32.mrf.mxu2 }
 0x176   : > { %v1166_v13 = vunpack.c.l.b16 %v979_v58  ;;  %v1165_v14 = vunpack.c.l.b16 %v978_v59  ;;  %v3349_v58 = vpop.permute.xlu2 %3348 }
 0x177   : > { %v1136_v34 = vunpack.c.l.b16 %v977_v31  ;;  %v1135_v35 = vunpack.c.l.b16 %v976_v32  ;;  %v1361_v32 = vadd.s32 8, %v1360_v4  ;;  %v3351_v59 = vunpack.i.h.bf16 %v3349_v58 }
 0x178   : > { %v1167_v26 = vpack.c.b16 %v1166_v13, %v1165_v14 }
 0x179   : > { %v1137_v37 = vpack.c.b16 %v1136_v34, %v1135_v35  ;;  %v3319_v38 = vpop.permute.xlu1 %3318  ;;  %v3311_v34 = vunpack.i.h.bf16 %v3986_v20  ;;  %v3310_v35 = vunpack.i.l.bf16 %v3986_v20  ;;  %vm4011_vm3 = vcmp.le.s32.totalorder %v1363_v5, %v1361_v32 }
 0x17a   : > { %v3314_v39 = vpop.permute.xlu0 %3313  ;;  %v3321_v41 = vunpack.i.h.bf16 %v3319_v38  ;;  %v3320_v42 = vunpack.i.l.bf16 %v3319_v38  ;;  %v1093_v1 = vpack.c.bf16 %v3351_v59, %v3351_v59 }
 0x17b   : > { %v3316_v43 = vunpack.i.h.bf16 %v3314_v39  ;;  %v3315_v44 = vunpack.i.l.bf16 %v3314_v39  ;;  %2929 = vmatmul.msk.bf16.vlgmr.msrb.gmra.mxu3 %vm1112_vm0, %v1137_v37  ;;  %v1255_v37 = vunpack.c.l.b16 %v984_v28 }
 0x17c   : > { %1186 = vmatpush.bf16.xpose.msra.mxu3 %v1177_v27  ;;  %v1045_v52 = vpack.c.bf16 %v3321_v41, %v3321_v41  ;;  %v1044_v53 = vpack.c.bf16 %v3320_v42, %v3320_v42  ;;  %v985_v27 = vpack.c.bf16 %v3341_v15, %v3341_v15  ;;  %v981_v41 = vpack.c.bf16 %v3311_v34, %v3311_v34 }
 0x17d   : > { %v1043_v49 = vpack.c.bf16 %v3316_v43, %v3316_v43  ;;  %v1042_v50 = vpack.c.bf16 %v3315_v44, %v3315_v44  ;;  %v980_v43 = vpack.c.bf16 %v3310_v35, %v3310_v35  ;;  %v1671_v5 = vunpack.c.l.b16 %v1093_v1 }
 0x17e   : > { %v1321_v6 = vunpack.c.l.b16 %v1045_v52  ;;  %v1320_v7 = vunpack.c.l.b16 %v1044_v53  ;;  %v1256_v36 = vunpack.c.l.b16 %v985_v27  ;;  %v1196_v47 = vunpack.c.l.b16 %v981_v41 }
 0x17f   : > { %v1291_v54 = vunpack.c.l.b16 %v1043_v49  ;;  %v1290_v55 = vunpack.c.l.b16 %v1042_v50  ;;  %v1195_v48 = vunpack.c.l.b16 %v980_v43 }
 0x180   : > { %v1322_v22 = vpack.c.b16 %v1321_v6, %v1320_v7  ;;  %v1257_v44 = vpack.c.b16 %v1256_v36, %v1255_v37 }
 0x181   : > { %v3334_v60 = vpop.permute.xlu1 %3333  ;;  %v1292_v61 = vpack.c.b16 %v1291_v54, %v1290_v55  ;;  %v1197_v52 = vpack.c.b16 %v1196_v47, %v1195_v48 }
 0x182   : > { %v3336_v2 = vunpack.i.h.bf16 %v3334_v60  ;;  %v3335_v3 = vunpack.i.l.bf16 %v3334_v60  ;;  %v1327_v33 = vsel %vm1112_vm0, %v1322_v22, 0  ;;  %v3329_v54 = vpop.permute.xlu0 %3328  ;;  %v3350_v60 = vunpack.i.l.bf16 %v3349_v58 }
 0x183   : > { %v1297_v8 = vsel %vm1112_vm0, %v1292_v61, 0  ;;  %v3331_v55 = vunpack.i.h.bf16 %v3329_v54  ;;  %v3330_v56 = vunpack.i.l.bf16 %v3329_v54 }
 0x184   : > { %1216 = vmatpush.bf16.xpose.msrb.mxu3 %v1207_v40  ;;  %v1041_v11 = vpack.c.bf16 %v3336_v2, %v3336_v2  ;;  %v1040_v12 = vpack.c.bf16 %v3335_v3, %v3335_v3  ;;  %1306 = vmatpush.bf16.xpose.msrb.mxu2 %v1297_v8  ;;  %v1092_v2 = vpack.c.bf16 %v3350_v60, %v3350_v60 }
 0x185   : > { %v989_v3 = vpack.c.bf16 %v3331_v55, %v3331_v55  ;;  %v988_v4 = vpack.c.bf16 %v3330_v56, %v3330_v56 }
 0x186   : > { %v1261_v17 = vunpack.c.l.b16 %v1041_v11  ;;  %v1260_v18 = vunpack.c.l.b16 %v1040_v12  ;;  %v1128_v19 = vpop.f32.mrf.mxu3  ;;  %v1670_v6 = vunpack.c.l.b16 %v1092_v2  ;;  %v1086_v11 = vpack.c.bf16 %v3976_v62, %v3976_v62 }
 0x187   : > { %v1343_v23 = vmul.f32 0.17677669, %v1128_v19  ;;  %v1316_v8 = vunpack.c.l.b16 %v989_v3  ;;  %v1315_v9 = vunpack.c.l.b16 %v988_v4  ;;  %v1087_v12 = vpack.c.bf16 %v3978_v63, %v3978_v63 }
 0x188   : > { %v1262_v25 = vpack.c.b16 %v1261_v17, %v1260_v18  ;;  %v1672_v7 = vpack.c.b16 %v1671_v5, %v1670_v6  ;;  %v1586_v13 = vunpack.c.l.b16 %v1086_v11  ;;  %v4042_v17 = vpop.f32.mrf.mxu2  ;;  %v1094_v18 = vpack.c.bf16 %v4040_v16, %v4040_v16 }
 0x189   : > { %v3999_v29 = vsel %vm3993_vm1, %v1343_v23, -3.4028235e+38  ;;  %v1317_v10 = vpack.c.b16 %v1316_v8, %v1315_v9  ;;  %v1587_v14 = vunpack.c.l.b16 %v1087_v12  ;;  %v1095_v19 = vpack.c.bf16 %v4042_v17, %v4042_v17 }
 0x18a   : > { %v1267_v30 = vsel %vm1112_vm0, %v1262_v25, 0  ;;  %v1387_v31 = vsel %vm1386_vm2, %v3999_v29, -inf  ;;  %v1698_v62 = vunpack.c.l.b16 %v1094_v18 }
 0x18b   : > { %2930 = vmatmul.msk.bf16.vlgmr.msra.gmra.mxu3 %vm1112_vm0, %v1167_v26  ;;  %2934 = vmatmul.msk.bf16.vlgmr.msrb.gmra.mxu2 %vm1112_vm0, %v1287_v24  ;;  %v1588_v15 = vpack.c.b16 %v1587_v14, %v1586_v13  ;;  %v1699_v24 = vunpack.c.l.b16 %v1095_v19 }
 0x18c   : > { %1336 = vmatpush.bf16.xpose.msra.mxu3 %v1327_v33  ;;  %1276 = vmatpush.bf16.xpose.msra.mxu1 %v1267_v30 }
 0x18d   : > { %1388 = vmax.xlane.f32.xlu2 %v1387_v31  ;;  %1600 = vmatpush.bf16.msrb.mxu0 %v1588_v15  ;;  %v1700_v26 = vpack.c.b16 %v1699_v24, %v1698_v62 }
 0x18e   : > { %v1130_v38 = vpop.f32.mrf.mxu3 }
 0x18f   : > { %v1344_v40 = vmul.f32 0.17677669, %v1130_v38 }
 0x190   : > { %v1248_v42 = vpop.f32.mrf.mxu1 }
 0x191   : > { %v4017_v45 = vsel %vm4011_vm3, %v1344_v40, -3.4028235e+38  ;;  %v1351_v20 = vmul.f32 0.17677669, %v1248_v42  ;;  %1712 = vmatpush.bf16.msra.mxu0 %v1700_v26 }
 0x192   : > { %v1390_v46 = vsel %vm1386_vm2, %v4017_v45, -inf }
 0x193   : > { %2933 = vmatmul.msk.bf16.vlgmr.msra.gmra.mxu1 %vm1112_vm0, %v1257_v44  ;;  %1391 = vmax.xlane.f32.xlu0 %v1390_v46  ;;  %v4024_v49 = vsel %vm3993_vm1, %v1351_v20, -3.4028235e+38 }
 0x194   : > { %v1411_v50 = vsel %vm1386_vm2, %v4024_v49, -inf }
 0x198   : > { %v1250_v51 = vpop.f32.mrf.mxu1 }
 0x199   : > { %v1352_v53 = vmul.f32 0.17677669, %v1250_v51 }
 0x19b   : > { %2931 = vmatmul.msk.bf16.vlgmr.msrb.gmra.mxu3 %vm1112_vm0, %v1197_v52  ;;  %1412 = vmax.xlane.f32.xlu0 %v1411_v50  ;;  %v4031_v57 = vsel %vm4011_vm3, %v1352_v53, -3.4028235e+38 }
 0x19c   : > { %v1414_v61 = vsel %vm1386_vm2, %v4031_v57, -inf  ;;  %1684 = vmatpush.bf16.msrb.mxu3 %v1672_v7 }
 0x1a3   : > { %1415 = vmax.xlane.f32.xlu0 %v1414_v61 }
 0x1ab   : > { %2935 = vmatmul.msk.bf16.vlgmr.msra.gmra.mxu3 %vm1112_vm0, %v1317_v10  ;;  %v3344_v10 = vpop.permute.xlu1 %3343 }
 0x1ac   : > { %v3345_v11 = vunpack.i.l.bf16 %v3344_v10 }
 0x1ae   : > { %v1090_v12 = vpack.c.bf16 %v3345_v11, %v3345_v11 }
 0x1b0   : > { %v1642_v14 = vunpack.c.l.b16 %v1090_v12 }
 0x1fe   : > { %v1158_v22 = vpop.f32.mrf.mxu3 }
 0x1ff   : > { %v1345_v23 = vmul.f32 0.17677669, %v1158_v22 }
 0x201   : > { %v4050_v63 = vsel %vm3993_vm1, %v1345_v23, -3.4028235e+38 }
 0x202   : > { %v1393_v25 = vsel %vm1386_vm2, %v4050_v63, -inf }
 0x203   : > { %1394 = vmax.xlane.f32.xlu0 %v1393_v25 }
 0x206   : > { %v1160_v27 = vpop.f32.mrf.mxu3  ;;  %v4120_v23 = vpop.xlane.xlu0 %1391 }
 0x207   : > { %v1346_v28 = vmul.f32 0.17677669, %v1160_v27 }
 0x209   : > { %v4056_v30 = vsel %vm4011_vm3, %v1346_v28, -3.4028235e+38 }
 0x20a   : > { %v1396_v31 = vsel %vm1386_vm2, %v4056_v30, -inf }
 0x20b   : > { %1397 = vmax.xlane.f32.xlu1 %v1396_v31 }
 0x20e   : > { %v1188_v32 = vpop.f32.mrf.mxu3  ;;  %v1308_v33 = vpop.f32.mrf.mxu2 }
 0x20f   : > { %v1355_v34 = vmul.f32 0.17677669, %v1308_v33  ;;  %v1347_v42 = vmul.f32 0.17677669, %v1188_v32  ;;  %v4124_v24 = vpop.xlane.xlu0 %1412 }
 0x210   : > { %v1278_v35 = vpop.f32.mrf.mxu1 }
 0x211   : > { %v1353_v36 = vmul.f32 0.17677669, %v1278_v35  ;;  %v4062_v37 = vsel %vm3993_vm1, %v1355_v34, -3.4028235e+38  ;;  %v4074_v46 = vsel %vm3993_vm1, %v1347_v42, -3.4028235e+38  ;;  %v4134_v35 = vpop.xlane.xlu2 %1388 }
 0x212   : > { %v1423_v38 = vsel %vm1386_vm2, %v4062_v37, -inf  ;;  %v1399_v48 = vsel %vm1386_vm2, %v4074_v46, -inf }
 0x213   : > { %1424 = vmax.xlane.f32.xlu2 %v1423_v38  ;;  %v4068_v40 = vsel %vm3993_vm1, %v1353_v36, -3.4028235e+38 }
 0x214   : > { %v1417_v41 = vsel %vm1386_vm2, %v4068_v40, -inf }
 0x215   : > { %1418 = vmax.xlane.f32.xlu0 %v1417_v41 }
 0x216   : > { %v1190_v43 = vpop.f32.mrf.mxu3  ;;  %v1310_v18 = vpop.f32.mrf.mxu2 }
 0x217   : > { %v1348_v51 = vmul.f32 0.17677669, %v1190_v43  ;;  %v1356_v19 = vmul.f32 0.17677669, %v1310_v18  ;;  %v4126_v25 = vpop.xlane.xlu0 %1415 }
 0x218   : > { %v1280_v44 = vpop.f32.mrf.mxu1 }
 0x219   : > { %v1354_v20 = vmul.f32 0.17677669, %v1280_v44  ;;  %v4090_v55 = vsel %vm4011_vm3, %v1348_v51, -3.4028235e+38  ;;  %v4118_v22 = vsel %vm4011_vm3, %v1356_v19, -3.4028235e+38 }
 0x21a   : > { %v1402_v58 = vsel %vm1386_vm2, %v4090_v55, -inf  ;;  %v1426_v62 = vsel %vm1386_vm2, %v4118_v22, -inf }
 0x21b   : > { %v4078_v47 = vsel %vm4011_vm3, %v1354_v20, -3.4028235e+38 }
 0x21c   : > { %v1420_v50 = vsel %vm1386_vm2, %v4078_v47, -inf }
 0x21d   : > { %1400 = vmax.xlane.f32.xlu0 %v1399_v48  ;;  %1421 = vmax.xlane.f32.xlu1 %v1420_v50 }
 0x21e   : > { %v1218_v52 = vpop.f32.mrf.mxu3 }
 0x21f   : > { %v1349_v53 = vmul.f32 0.17677669, %v1218_v52 }
 0x221   : > { %v4086_v54 = vsel %vm3993_vm1, %v1349_v53, -3.4028235e+38 }
 0x222   : > { %v1405_v56 = vsel %vm1386_vm2, %v4086_v54, -inf }
 0x223   : > { %1406 = vmax.xlane.f32.xlu2 %v1405_v56 }
 0x225   : > { %1403 = vmax.xlane.f32.xlu1 %v1402_v58 }
 0x226   : > { %v1220_v59 = vpop.f32.mrf.mxu3 }
 0x227   : > { %v1350_v60 = vmul.f32 0.17677669, %v1220_v59 }
 0x229   : > { %v4098_v61 = vsel %vm4011_vm3, %v1350_v60, -3.4028235e+38 }
 0x22a   : > { %v1408_v1 = vsel %vm1386_vm2, %v4098_v61, -inf }
 0x22b   : > { %1409 = vmax.xlane.f32.xlu2 %v1408_v1 }
 0x22e   : > { %v1338_v2 = vpop.f32.mrf.mxu3 }
 0x22f   : > { %v1357_v3 = vmul.f32 0.17677669, %v1338_v2 }
 0x231   : > { %3353 = vrot.lane.b32.xlu0 %v3982_v0, %s3689_s0  ;;  %v4106_v4 = vsel %vm3993_vm1, %v1357_v3, -3.4028235e+38  ;;  %v3346_v0 = vunpack.i.h.bf16 %v3344_v10 }
 0x232   : > { %v1429_v5 = vsel %vm1386_vm2, %v4106_v4, -inf }
 0x233   : > { %1430 = vmax.xlane.f32.xlu1 %v1429_v5  ;;  %v1091_v21 = vpack.c.bf16 %v3346_v0, %v3346_v0 }
 0x235   : > { %v1643_v13 = vunpack.c.l.b16 %v1091_v21 }
 0x236   : > { %v1340_v6 = vpop.f32.mrf.mxu3 }
 0x237   : > { %v1358_v7 = vmul.f32 0.17677669, %v1340_v6  ;;  %v1644_v15 = vpack.c.b16 %v1643_v13, %v1642_v14 }
 0x239   : > { %v4112_v8 = vsel %vm4011_vm3, %v1358_v7, -3.4028235e+38  ;;  %1656 = vmatpush.bf16.msra.mxu2 %v1644_v15 }
 0x23a   : > { %v1432_v9 = vsel %vm1386_vm2, %v4112_v8, -inf }
 0x23b   : > { %1433 = vmax.xlane.f32.xlu2 %v1432_v9 }
 0x25b   : > { %1427 = vmax.xlane.f32.xlu0 %v1426_v62 }
 0x276   : > { %v1395_v26 = vpop.xlane.xlu0 %1394 }
 0x277   : > { %v1437_v27 = vsub.f32 %v4050_v63, %v1395_v26 }
 0x279   : > { %v1455_v28 = vmul.f32 1.442695, %v1437_v27 }
 0x27b   : > { %3407 = vpow2.f32 %v1455_v28 }
 0x27e   : > { %v1398_v31 = vpop.xlane.xlu1 %1397 }
 0x27f   : > { %v1438_v39 = vsub.f32 %v4056_v30, %v1398_v31 }
 0x281   : > { %v4130_v32 = vpop.eup %3407  ;;  %v1457_v33 = vmul.f32 1.442695, %v1438_v39 }
 0x282   : > { %v1489_v34 = vsel %vm1386_vm2, %v4130_v32, 0.0 }
 0x283   : > { %3409 = vpow2.f32 %v1457_v33  ;;  %1490 = vadd.xlane.f32.xlu2 %v1489_v34 }
 0x286   : > { %v1425_v30 = vpop.xlane.xlu2 %1424 }
 0x287   : > { %v1447_v48 = vsub.f32 %v4062_v37, %v1425_v30 }
 0x288   : > { %v1419_v36 = vpop.xlane.xlu0 %1418 }
 0x289   : > { %v4136_v38 = vpop.eup %3409  ;;  %v1445_v63 = vsub.f32 %v4068_v40, %v1419_v36  ;;  %v1475_v40 = vmul.f32 1.442695, %v1447_v48 }
 0x28a   : > { %v1492_v41 = vsel %vm1386_vm2, %v4136_v38, 0.0 }
 0x28b   : > { %v1471_v42 = vmul.f32 1.442695, %v1445_v63  ;;  %1493 = vadd.xlane.f32.xlu0 %v1492_v41 }
 0x28d   : > { %3411 = vpow2.f32 %v1471_v42 }
 0x290   : > { %v1401_v43 = vpop.xlane.xlu0 %1400  ;;  %v1422_v44 = vpop.xlane.xlu1 %1421 }
 0x291   : > { %v1439_v20 = vsub.f32 %v4074_v46, %v1401_v43  ;;  %v1446_v37 = vsub.f32 %v4078_v47, %v1422_v44 }
 0x293   : > { %v4143_v50 = vpop.eup %3411  ;;  %v1459_v51 = vmul.f32 1.442695, %v1439_v20  ;;  %v1473_v3 = vmul.f32 1.442695, %v1446_v37 }
 0x294   : > { %v1513_v52 = vsel %vm1386_vm2, %v4143_v50, 0.0 }
 0x295   : > { %3413 = vpow2.f32 %v1459_v51  ;;  %1514 = vadd.xlane.f32.xlu2 %v1513_v52  ;;  %v1436_v51 = vsub.f32 %v4017_v45, %v4120_v23 }
 0x296   : > { %v1407_v53 = vpop.xlane.xlu2 %1406  ;;  %3415 = vpow2.f32 %v1475_v40 }
 0x297   : > { %v1441_v56 = vsub.f32 %v4086_v54, %v1407_v53  ;;  %v1453_v52 = vmul.f32 1.442695, %v1436_v51 }
 0x298   : > { %v1404_v58 = vpop.xlane.xlu1 %1403 }
 0x299   : > { %v1463_v59 = vmul.f32 1.442695, %v1441_v56  ;;  %v1440_v60 = vsub.f32 %v4090_v55, %v1404_v58 }
 0x29b   : > { %v4149_v46 = vpop.eup %3413  ;;  %3417 = vpow2.f32 %v1463_v59  ;;  %v1461_v1 = vmul.f32 1.442695, %v1440_v60 }
 0x29c   : > { %v1495_v2 = vsel %vm1386_vm2, %v4149_v46, 0.0  ;;  %v4154_v6 = vpop.eup %3415 }
 0x29d   : > { %3419 = vpow2.f32 %v1461_v1  ;;  %1496 = vadd.xlane.f32.xlu1 %v1495_v2  ;;  %v1519_v11 = vsel %vm1386_vm2, %v4154_v6, 0.0  ;;  %v1435_v1 = vsub.f32 %v3999_v29, %v4134_v35 }
 0x29e   : > { %v1410_v5 = vpop.xlane.xlu2 %1409  ;;  %3421 = vpow2.f32 %v1473_v3 }
 0x29f   : > { %v1442_v55 = vsub.f32 %v4098_v61, %v1410_v5 }
 0x2a1   : > { %v4156_v54 = vpop.eup %3417  ;;  %v1465_v12 = vmul.f32 1.442695, %v1442_v55  ;;  %v1451_v55 = vmul.f32 1.442695, %v1435_v1 }
 0x2a2   : > { %v1501_v7 = vsel %vm1386_vm2, %v4156_v54, 0.0 }
 0x2a3   : > { %v4161_v9 = vpop.eup %3419  ;;  %1502 = vadd.xlane.f32.xlu0 %v1501_v7  ;;  %v3354_v47 = vpop.permute.xlu0 %3353  ;;  %3423 = vpow2.f32 %v1465_v12 }
 0x2a4   : > { %v3356_v10 = vunpack.i.h.bf16 %v3354_v47  ;;  %v3355_v0 = vunpack.i.l.bf16 %v3354_v47  ;;  %v1498_v21 = vsel %vm1386_vm2, %v4161_v9, 0.0  ;;  %v4168_v62 = vpop.eup %3421 }
 0x2a5   : > { %1520 = vadd.xlane.f32.xlu1 %v1519_v11  ;;  %1499 = vadd.xlane.f32.xlu2 %v1498_v21  ;;  %v1516_v28 = vsel %vm1386_vm2, %v4168_v62, 0.0 }
 0x2a6   : > { %v1089_v61 = vpack.c.bf16 %v3356_v10, %v3356_v10  ;;  %v1088_v13 = vpack.c.bf16 %v3355_v0, %v3355_v0  ;;  %v1431_v14 = vpop.xlane.xlu1 %1430 }
 0x2a7   : > { %v1449_v15 = vsub.f32 %v4106_v4, %v1431_v14 }
 0x2a8   : > { %v1615_v18 = vunpack.c.l.b16 %v1089_v61  ;;  %v1614_v19 = vunpack.c.l.b16 %v1088_v13 }
 0x2a9   : > { %v1479_v26 = vmul.f32 1.442695, %v1449_v15  ;;  %v4173_v33 = vpop.eup %3423 }
 0x2aa   : > { %v1616_v27 = vpack.c.b16 %v1615_v18, %v1614_v19  ;;  %v1504_v63 = vsel %vm1386_vm2, %v4173_v33, 0.0 }
 0x2ab   : > { %3425 = vpow2.f32 %v1479_v26 }
 0x2ac   : > { %1628 = vmatpush.bf16.msrb.mxu1 %v1616_v27 }
 0x2ad   : > { %1517 = vadd.xlane.f32.xlu1 %v1516_v28 }
 0x2ae   : > { %v1434_v31 = vpop.xlane.xlu2 %1433 }
 0x2af   : > { %v1450_v39 = vsub.f32 %v4112_v8, %v1434_v31  ;;  %v3367_v8 = vpack.i.bf16 %v4042_v17, %v4040_v16  ;;  %v1443_v17 = vsub.f32 %v4024_v49, %v4124_v24 }
 0x2b1   : > { %v4175_v34 = vpop.eup %3425  ;;  %v1481_v4 = vmul.f32 1.442695, %v1450_v39  ;;  %v1467_v40 = vmul.f32 1.442695, %v1443_v17 }
 0x2b2   : > { %v1525_v36 = vsel %vm1386_vm2, %v4175_v34, 0.0 }
 0x2b3   : > { %3427 = vpow2.f32 %v1481_v4  ;;  %1526 = vadd.xlane.f32.xlu0 %v1525_v36 }
 0x2b5   : > { %1505 = vadd.xlane.f32.xlu1 %v1504_v63 }
 0x2b9   : > { %v4181_v41 = vpop.eup %3427 }
 0x2ba   : > { %v1528_v42 = vsel %vm1386_vm2, %v4181_v41, 0.0 }
 0x2bd   : > { %1529 = vadd.xlane.f32.xlu1 %v1528_v42 }
 0x2c7   : > { %3368 = vrot.lane.b32.xlu0 %v3367_v8, %s3689_s0 }
 0x2ce   : > { %v1428_v30 = vpop.xlane.xlu0 %1427 }
 0x2cf   : > { %v1448_v43 = vsub.f32 %v4118_v22, %v1428_v30 }
 0x2d1   : > { %v1477_v44 = vmul.f32 1.442695, %v1448_v43 }
 0x2d3   : > { %3429 = vpow2.f32 %v1477_v44 }
 0x2d4   : > { %3431 = vpow2.f32 %v1453_v52 }
 0x2d5   : > { %3433 = vpow2.f32 %v1467_v40 }
 0x2d6   : > { %3363 = vrot.lane.b32.xlu1 %v3367_v8, %s3687_s21 }
 0x2d9   : > { %v4190_v20 = vpop.eup %3429 }
 0x2da   : > { %v1522_v48 = vsel %vm1386_vm2, %v4190_v20, 0.0  ;;  %v4196_v16 = vpop.eup %3431 }
 0x2db   : > { %1523 = vadd.xlane.f32.xlu2 %v1522_v48  ;;  %v1486_v22 = vsel %vm1386_vm2, %v4196_v16, 0.0  ;;  %v4203_v56 = vpop.eup %3433 }
 0x2dc   : > { %v1507_v58 = vsel %vm1386_vm2, %v4203_v56, 0.0 }
 0x2f1   : > { %1487 = vadd.xlane.f32.xlu0 %v1486_v22 }
 0x2f3   : > { %3358 = vrot.lane.b32.xlu2 %v3367_v8, %s3688_s10 }
 0x2f6   : > { %v1491_v53 = vpop.xlane.xlu2 %1490 }
 0x2f7   : > { %3435 = vrcp.f32 %v1491_v53 }
 0x2fd   : > { %v3436_v23 = vpop.eup %3435 }
 0x2fe   : > { %v1494_v45 = vpop.xlane.xlu0 %1493  ;;  %v1549_v49 = vmul.f32 %v3436_v23, %v4130_v32  ;;  %v1444_v32 = vsub.f32 %v4031_v57, %v4126_v25 }
 0x2ff   : > { %3437 = vrcp.f32 %v1494_v45 }
 0x300   : > { %1508 = vadd.xlane.f32.xlu1 %v1507_v58  ;;  %v1565_v59 = vpack.c.bf16 %v1549_v49, %v1549_v49  ;;  %3439 = vpow2.f32 %v1451_v55  ;;  %v1469_v10 = vmul.f32 1.442695, %v1444_v32 }
 0x302   : > { %v1609_v2 = vunpack.c.l.b16 %v1565_v59 }
 0x305   : > { %v3438_v24 = vpop.eup %3437 }
 0x306   : > { %v1550_v60 = vmul.f32 %v3438_v24, %v4136_v38  ;;  %v4214_v0 = vpop.eup %3439 }
 0x307   : > { %v1483_v35 = vsel %vm1386_vm2, %v4214_v0, 0.0 }
 0x308   : > { %v1566_v37 = vpack.c.bf16 %v1550_v60, %v1550_v60  ;;  %v1515_v7 = vpop.xlane.xlu2 %1514 }
 0x30a   : > { %v1610_v3 = vunpack.c.l.b16 %v1566_v37 }
 0x30c   : > { %v1611_v5 = vpack.c.b16 %v1610_v3, %v1609_v2 }
 0x30e   : > { %2937 = vmatmul.msk.bf16.vlgmr.msrb.gmra.mxu1 %vm1386_vm2, %v1611_v5 }
 0x310   : > { %v1497_v47 = vpop.xlane.xlu1 %1496 }
 0x311   : > { %3441 = vrcp.f32 %v1497_v47 }
 0x316   : > { %v1503_v25 = vpop.xlane.xlu0 %1502 }
 0x317   : > { %v3442_v29 = vpop.eup %3441 }
 0x318   : > { %v1500_v38 = vpop.xlane.xlu2 %1499  ;;  %v4216_v11 = vpop.xlane.xlu1 %1520  ;;  %v1551_v21 = vmul.f32 %v3442_v29, %v4149_v46 }
 0x319   : > { %3443 = vrcp.f32 %v1500_v38 }
 0x31a   : > { %3445 = vpow2.f32 %v1469_v10  ;;  %v1567_v57 = vpack.c.bf16 %v1551_v21, %v1551_v21 }
 0x31b   : > { %3447 = vrcp.f32 %v1503_v25 }
 0x31c   : > { %1484 = vadd.xlane.f32.xlu2 %v1483_v35  ;;  %v1637_v19 = vunpack.c.l.b16 %v1567_v57 }
 0x31f   : > { %v3444_v12 = vpop.eup %3443 }
 0x320   : > { %v4221_v61 = vpop.eup %3445  ;;  %v1552_v13 = vmul.f32 %v3444_v12, %v4161_v9  ;;  %v1518_v14 = vpop.xlane.xlu1 %1517 }
 0x321   : > { %v1510_v18 = vsel %vm1386_vm2, %v4221_v61, 0.0  ;;  %v3448_v28 = vpop.eup %3447 }
 0x322   : > { %v1568_v15 = vpack.c.bf16 %v1552_v13, %v1552_v13  ;;  %v1553_v31 = vmul.f32 %v3448_v28, %v4156_v54 }
 0x324   : > { %v1638_v26 = vunpack.c.l.b16 %v1568_v15  ;;  %1511 = vadd.xlane.f32.xlu2 %v1510_v18  ;;  %v1569_v9 = vpack.c.bf16 %v1553_v31, %v1553_v31 }
 0x326   : > { %v1639_v27 = vpack.c.b16 %v1638_v26, %v1637_v19  ;;  %v1527_v36 = vpop.xlane.xlu0 %1526  ;;  %v1665_v8 = vunpack.c.l.b16 %v1569_v9 }
 0x328   : > { %2938 = vmatmul.msk.bf16.vlgmr.msra.gmra.mxu2 %vm1386_vm2, %v1639_v27  ;;  %v1506_v46 = vpop.xlane.xlu1 %1505 }
 0x329   : > { %3449 = vrcp.f32 %v1506_v46 }
 0x32a   : > { %3451 = vrcp.f32 %v1518_v14 }
 0x32b   : > { %3453 = vrcp.f32 %v1515_v7 }
 0x32f   : > { %v3450_v39 = vpop.eup %3449 }
 0x330   : > { %v1554_v4 = vmul.f32 %v3450_v39, %v4173_v33  ;;  %v3452_v42 = vpop.eup %3451  ;;  %v1530_v52 = vpop.xlane.xlu1 %1529 }
 0x331   : > { %v3454_v43 = vpop.eup %3453  ;;  %v1558_v48 = vmul.f32 %v3452_v42, %v4168_v62  ;;  %3455 = vrcp.f32 %v1530_v52 }
 0x332   : > { %v1570_v63 = vpack.c.bf16 %v1554_v4, %v1554_v4  ;;  %v1557_v51 = vmul.f32 %v3454_v43, %v4143_v50  ;;  %3457 = vrcp.f32 %v1527_v36 }
 0x333   : > { %v1574_v40 = vpack.c.bf16 %v1558_v48, %v1558_v48  ;;  %3459 = vrcp.f32 %v4216_v11 }
 0x334   : > { %v1666_v30 = vunpack.c.l.b16 %v1570_v63  ;;  %v1573_v45 = vpack.c.bf16 %v1557_v51, %v1557_v51 }
 0x335   : > { %v1722_v49 = vunpack.c.l.b16 %v1574_v40 }
 0x336   : > { %v1667_v44 = vpack.c.b16 %v1666_v30, %v1665_v8  ;;  %v1721_v59 = vunpack.c.l.b16 %v1573_v45 }
 0x337   : > { %v3456_v62 = vpop.eup %3455 }
 0x338   : > { %2939 = vmatmul.msk.bf16.vlgmr.msrb.gmra.mxu3 %vm1386_vm2, %v1667_v44  ;;  %v1723_v60 = vpack.c.b16 %v1722_v49, %v1721_v59  ;;  %v3458_v37 = vpop.eup %3457  ;;  %v1562_v50 = vmul.f32 %v3456_v62, %v4181_v41 }
 0x339   : > { %v3369_v54 = vpop.permute.xlu0 %3368  ;;  %v1561_v1 = vmul.f32 %v3458_v37, %v4175_v34  ;;  %v3460_v57 = vpop.eup %3459 }
 0x33a   : > { %v3371_v17 = vunpack.i.h.bf16 %v3369_v54  ;;  %v3370_v22 = vunpack.i.l.bf16 %v3369_v54  ;;  %v1578_v55 = vpack.c.bf16 %v1562_v50, %v1562_v50  ;;  %v1559_v25 = vmul.f32 %v3460_v57, %v4154_v6  ;;  %v3136_v57 = vld [vmem:[%s3879_s23] sm:$0xff] }
 0x33b   : > { %v1577_v32 = vpack.c.bf16 %v1561_v1, %v1561_v1 }
 0x33c   : > { %v1097_v53 = vpack.c.bf16 %v3371_v17, %v3371_v17  ;;  %v1096_v33 = vpack.c.bf16 %v3370_v22, %v3370_v22  ;;  %v1778_v29 = vunpack.c.l.b16 %v1578_v55  ;;  %v1575_v27 = vpack.c.bf16 %v1559_v25, %v1559_v25 }
 0x33d   : > { %v1777_v12 = vunpack.c.l.b16 %v1577_v32  ;;  %v3142_v32 = vld [vmem:[%s3879_s23 + $0x30] sm:$0xff] }
 0x33e   : > { %v1727_v23 = vunpack.c.l.b16 %v1097_v53  ;;  %v1726_v58 = vunpack.c.l.b16 %v1096_v33  ;;  %v1749_v9 = vunpack.c.l.b16 %v1575_v27 }
 0x33f   : > { %v1779_v41 = vpack.c.b16 %v1778_v29, %v1777_v12  ;;  %v3141_v29 = vld [vmem:[%s3879_s23 + $0x28] sm:$0xff]  ;;  %v3138_v12 = vld [vmem:[%s3879_s23 + $0x10] sm:$0xff] }
 0x340   : > { %v1728_v24 = vpack.c.b16 %v1727_v23, %v1726_v58 }
 0x342   : > { %1740 = vmatpush.bf16.msra.mxu1 %v1728_v24 }
 0x345   : > { %2941 = vmatmul.msk.bf16.vlgmr.msra.gmra.mxu1 %vm1386_vm2, %v1723_v60 }
 0x348   : > { %v3364_v2 = vpop.permute.xlu1 %3363 }
 0x349   : > { %v3366_v3 = vunpack.i.h.bf16 %v3364_v2  ;;  %v3365_v5 = vunpack.i.l.bf16 %v3364_v2 }
 0x34b   : > { %v1101_v7 = vpack.c.bf16 %v3366_v3, %v3366_v3  ;;  %v1100_v47 = vpack.c.bf16 %v3365_v5, %v3365_v5 }
 0x34d   : > { %v1783_v10 = vunpack.c.l.b16 %v1101_v7  ;;  %v1782_v38 = vunpack.c.l.b16 %v1100_v47  ;;  %v3143_v47 = vld [vmem:[%s3879_s23 + $0x38] sm:$0xff] }
 0x34e   : > { %v1524_v35 = vpop.xlane.xlu2 %1523 }
 0x34f   : > { %v1784_v21 = vpack.c.b16 %v1783_v10, %v1782_v38  ;;  %3461 = vrcp.f32 %v1524_v35  ;;  %v3140_v35 = vld [vmem:[%s3879_s23 + $0x20] sm:$0xff] }
 0x351   : > { %1796 = vmatpush.bf16.msra.mxu3 %v1784_v21  ;;  %v3139_v21 = vld [vmem:[%s3879_s23 + $0x18] sm:$0xff] }
 0x354   : > { %2943 = vmatmul.msk.bf16.vlgmr.msra.gmra.mxu3 %vm1386_vm2, %v1779_v41  ;;  %v3137_v41 = vld [vmem:[%s3879_s23 + $0x8] sm:$0xff] }
 0x355   : > { %v3462_v34 = vpop.eup %3461 }
 0x356   : > { %v1560_v13 = vmul.f32 %v3462_v34, %v4190_v20  ;;  %v3359_v14 = vpop.permute.xlu2 %3358 }
 0x357   : > { %v3361_v15 = vunpack.i.h.bf16 %v3359_v14  ;;  %v3360_v11 = vunpack.i.l.bf16 %v3359_v14 }
 0x358   : > { %v1576_v18 = vpack.c.bf16 %v1560_v13, %v1560_v13 }
 0x359   : > { %v1099_v19 = vpack.c.bf16 %v3361_v15, %v3361_v15  ;;  %v1098_v26 = vpack.c.bf16 %v3360_v11, %v3360_v11 }
 0x35a   : > { %v1750_v31 = vunpack.c.l.b16 %v1576_v18 }
 0x35b   : > { %v1755_v46 = vunpack.c.l.b16 %v1099_v19  ;;  %v1754_v28 = vunpack.c.l.b16 %v1098_v26 }
 0x35c   : > { %v1751_v4 = vpack.c.b16 %v1750_v31, %v1749_v9 }
 0x35d   : > { %v1756_v39 = vpack.c.b16 %v1755_v46, %v1754_v28 }
 0x35f   : > { %1768 = vmatpush.bf16.msrb.mxu2 %v1756_v39 }
 0x362   : > { %2942 = vmatmul.msk.bf16.vlgmr.msrb.gmra.mxu2 %vm1386_vm2, %v1751_v4 }
 0x364   : > { %v1488_v36 = vpop.xlane.xlu0 %1487 }
 0x365   : > { %3463 = vrcp.f32 %v1488_v36 }
 0x36b   : > { %v3464_v63 = vpop.eup %3463 }
 0x36c   : > { %v1548_v42 = vmul.f32 %v3464_v63, %v4196_v16 }
 0x36e   : > { %v1564_v44 = vpack.c.bf16 %v1548_v42, %v1548_v42 }
 0x370   : > { %v1582_v17 = vunpack.c.l.b16 %v1564_v44 }
 0x373   : > { %v1509_v48 = vpop.xlane.xlu1 %1508 }
 0x38b   : > { %v1630_v6 = vpop.f32.mrf.mxu1 }
 0x38f   : > { %v1485_v20 = vpop.xlane.xlu2 %1484 }
 0x390   : > { %3465 = vrcp.f32 %v1485_v20 }
 0x393   : > { %v1632_v8 = vpop.f32.mrf.mxu1 }
 0x394   : > { %v3372_v30 = vpack.i.bf16 %v1632_v8, %v1630_v6 }
 0x396   : > { %v3466_v43 = vpop.eup %3465  ;;  %3373 = vrot.lane.b32.xlu0 %v3372_v30, %s3687_s21 }
 0x397   : > { %v1547_v51 = vmul.f32 %v3466_v43, %v4214_v0  ;;  %v1512_v54 = vpop.xlane.xlu2 %1511 }
 0x398   : > { %3467 = vrcp.f32 %v1512_v54 }
 0x399   : > { %v1563_v52 = vpack.c.bf16 %v1547_v51, %v1547_v51  ;;  %3469 = vrcp.f32 %v1509_v48 }
 0x39b   : > { %v1581_v22 = vunpack.c.l.b16 %v1563_v52 }
 0x39d   : > { %v1583_v40 = vpack.c.b16 %v1582_v17, %v1581_v22 }
 0x39e   : > { %v3468_v53 = vpop.eup %3467 }
 0x39f   : > { %2936 = vmatmul.msk.bf16.vlgmr.msrb.gmra.mxu0 %vm1386_vm2, %v1583_v40  ;;  %v3470_v16 = vpop.eup %3469  ;;  %v1556_v33 = vmul.f32 %v3468_v53, %v4221_v61 }
 0x3a0   : > { %v1555_v45 = vmul.f32 %v3470_v16, %v4203_v56  ;;  %1931 = vmatpush.bf16.msrb.mxu0 %v3143_v47 }
 0x3a1   : > { %v1572_v23 = vpack.c.bf16 %v1556_v33, %v1556_v33 }
 0x3a2   : > { %v1571_v58 = vpack.c.bf16 %v1555_v45, %v1555_v45 }
 0x3a3   : > { %v1694_v49 = vunpack.c.l.b16 %v1572_v23 }
 0x3a4   : > { %v1693_v24 = vunpack.c.l.b16 %v1571_v58  ;;  %1932 = vmatpush.bf16.msrb.mxu0 %v3142_v32  ;;  %v3489_v58 = vld [vmem:[#allocation2 + $0x10] sm:$0xff] }
 0x3a6   : > { %v1695_v59 = vpack.c.b16 %v1694_v49, %v1693_v24 }
 0x3a8   : > { %1933 = vmatpush.bf16.msrb.mxu0 %v3141_v29 }
 0x3ab   : > { %v1658_v0 = vpop.f32.mrf.mxu2 }
 0x3ac   : > { %1934 = vmatpush.bf16.msrb.mxu0 %v3140_v35 }
 0x3af   : > { %2940 = vmatmul.msk.bf16.vlgmr.msra.gmra.mxu0 %vm1386_vm2, %v1695_v59 }
 0x3b0   : > { %1935 = vmatpush.bf16.msrb.mxu0 %v3139_v21 }
 0x3b3   : > { %v1660_v62 = vpop.f32.mrf.mxu2 }
 0x3b4   : > { %v3377_v60 = vpack.i.bf16 %v1660_v62, %v1658_v0  ;;  %1936 = vmatpush.bf16.msrb.mxu0 %v3138_v12  ;;  %v3490_v0 = vld [vmem:[#allocation2] sm:$0xff] }
 0x3b6   : > { %3378 = vrot.lane.b32.xlu1 %v3377_v60, %s3688_s10  ;;  %v3491_v60 = vld [vmem:[#allocation2 + $0x18] sm:$0xff] }
 0x3b8   : > { %1937 = vmatpush.bf16.msrb.mxu0 %v3137_v41 }
 0x3bb   : > { %v1686_v37 = vpop.f32.mrf.mxu3 }
 0x3bc   : > { %1938 = vmatpush.bf16.msrb.mxu0 %v3136_v57 }
 0x3c2   : > { %v1742_v50 = vpop.f32.mrf.mxu1 }
 0x3c3   : > { %v1688_v1 = vpop.f32.mrf.mxu3 }
 0x3c4   : > { %v3382_v61 = vpack.i.bf16 %v1688_v1, %v1686_v37  ;;  %v3492_v1 = vld [vmem:[#allocation2 + $0x8] sm:$0xff] }
 0x3c6   : > { %3383 = vrot.lane.b32.xlu2 %v3382_v61, %s3689_s0 }
 0x3ca   : > { %v1744_v56 = vpop.f32.mrf.mxu1 }
 0x3cb   : > { %v3387_v2 = vpack.i.bf16 %v1744_v56, %v1742_v50  ;;  %v3690_v56 = vmov 128.0  }
 0x3cc   : > { %3471 = vrcp.f32 %v3690_v56 }
 0x3cd   : > { %3388 = vrot.lane.b32.xlu0 %v3387_v2, %s3687_s21 }
 0x3d2   : > { %v3472_v2 = vpop.eup %3471 }
 0x3d3   : > { %vm1969_vm6 = vweird.f32 %v3472_v2 }
 0x3d7   : > { %v1798_v3 = vpop.f32.mrf.mxu3 }
 0x3df   : > { %v1800_v5 = vpop.f32.mrf.mxu3 }
 0x3e0   : > { %v3397_v55 = vpack.i.bf16 %v1800_v5, %v1798_v3  ;;  %v1965_v3 = vmul.f32 128.0, %v3472_v2 }
 0x3e2   : > { %3398 = vrot.lane.b32.xlu0 %v3397_v55, %s3689_s0  ;;  %v1966_v5 = vsub.f32 1.0, %v1965_v3  ;;  %v2978_v3 = vld [vmem:[%s3861_s7] sm:$0xf] }
 0x3e4   : > { %v1967_v55 = vmul.f32 %v3472_v2, %v1966_v5  ;;  %v3145_v5 = vld [vmem:[%s3861_s7 + $0x4] sm:$0xf0] }
 0x3e5   : > { %v1770_v7 = vpop.f32.mrf.mxu2 }
 0x3ed   : > { %v1772_v10 = vpop.f32.mrf.mxu2 }
 0x3ee   : > { %v3392_v38 = vpack.i.bf16 %v1772_v10, %v1770_v7  ;;  %v1968_v7 = vadd.f32 %v3472_v2, %v1967_v55 }
 0x3f0   : > { %3393 = vrot.lane.b32.xlu1 %v3392_v38, %s3688_s10  ;;  %v4272_v47 = vsel %vm1969_vm6, %v3472_v2, %v1968_v7  ;;  %v2988_v2 = vld [vmem:[%s3861_s7 + $0x18] sm:$0xf0] }
 0x408   : > { %v3374_v25 = vpop.permute.xlu0 %3373 }
 0x409   : > { %v3376_v15 = vunpack.i.h.bf16 %v3374_v25  ;;  %v3375_v11 = vunpack.i.l.bf16 %v3374_v25 }
 0x41c   : > { %v1602_v34 = vpop.f32.mrf.mxu0 }
 0x41d   : > { %v1827_v27 = vsel %vm1112_vm0, %v1602_v34, %v3375_v11 }
 0x420   : > { %v3384_v13 = vpop.permute.xlu2 %3383 }
 0x421   : > { %v3386_v46 = vunpack.i.h.bf16 %v3384_v13  ;;  %v3385_v28 = vunpack.i.l.bf16 %v3384_v13 }
 0x424   : > { %v1604_v14 = vpop.f32.mrf.mxu0 }
 0x425   : > { %v1828_v31 = vsel %vm1112_vm0, %v1604_v14, %v3376_v15 }
 0x428   : > { %v3379_v18 = vpop.permute.xlu1 %3378 }
 0x429   : > { %v3381_v19 = vunpack.i.h.bf16 %v3379_v18  ;;  %v3380_v26 = vunpack.i.l.bf16 %v3379_v18 }
 0x42b   : > { %v1831_v39 = vsel %vm1829_vm4, %v1828_v31, %v3381_v19  ;;  %v1830_v9 = vsel %vm1829_vm4, %v1827_v27, %v3380_v26  ;;  %v3034_v19 = vld [vmem:[%s3861_s7 + $0x70] sm:$0xf]  ;;  %v3159_v26 = vld [vmem:[%s3861_s7 + $0x74] sm:$0xf0]  ;;  %v3158_v27 = vld [vmem:[%s3861_s7 + $0x74] sm:$0xf] }
 0x42c   : > { %v1833_v4 = vsel %vm1832_vm5, %v1830_v9, %v3385_v28  ;;  %v1834_v36 = vsel %vm1832_vm5, %v1831_v39, %v3386_v46  ;;  %v1714_v20 = vpop.f32.mrf.mxu0  ;;  %v3035_v46 = vor.u32 %v3159_v26, %v3034_v19  ;;  %v3036_v28 = vld [vmem:[%s3861_s7 + $0x78] sm:$0xf0]  ;;  %v3026_v39 = vld [vmem:[%s3861_s7 + $0x60] sm:$0xf]  ;;  %v3157_v9 = vld [vmem:[%s3861_s7 + $0x64] sm:$0xf0] }
 0x42d   : > { %v1865_v6 = vpack.c.bf16 %v1834_v36, %v1833_v4  ;;  %v3039_v31 = vor.u32 %v3158_v27, %v3036_v28  ;;  %v3156_v4 = vld [vmem:[%s3861_s7 + $0x64] sm:$0xf]  ;;  %v3027_v36 = vor.u32 %v3157_v9, %v3026_v39 }
 0x42e   : > { %2175 = vmatpush.bf16.msrb.mxu1 %v3035_v46 }
 0x42f   : > { %1939 = vmatmul.bf16.vlgmr.msrb.gmra.mxu0 %v1865_v6  ;;  %2194 = vmatpush.bf16.msra.mxu2 %v3039_v31  ;;  %v3028_v6 = vld [vmem:[%s3861_s7 + $0x68] sm:$0xf0]  ;;  %v4333_v31 = vld [vmem:[%s4529_s5] ss:$0 sm:$0xff] }
 0x432   : > { %2176 = vmatpush.bf16.msrb.mxu1 %v3027_v36 }
 0x434   : > { %v1716_v44 = vpop.f32.mrf.mxu0 }
 0x43f   : > { %v3389_v63 = vpop.permute.xlu0 %3388 }
 0x440   : > { %v3391_v42 = vunpack.i.h.bf16 %v3389_v63  ;;  %v3390_v8 = vunpack.i.l.bf16 %v3389_v63  ;;  %v3018_v63 = vld [vmem:[%s3861_s7 + $0x50] sm:$0xf] }
 0x442   : > { %v1859_v54 = vsel %vm1112_vm0, %v1714_v20, %v3390_v8  ;;  %v1860_v52 = vsel %vm1112_vm0, %v1716_v44, %v3391_v42  ;;  %v3031_v20 = vor.u32 %v3156_v4, %v3028_v6  ;;  %v3155_v42 = vld [vmem:[%s3861_s7 + $0x54] sm:$0xf0]  ;;  %v3154_v8 = vld [vmem:[%s3861_s7 + $0x54] sm:$0xf]  ;;  %v4342_v6 = vld [vmem:[%s665_s25] ss:$0 sm:$0xff] }
 0x444   : > { %2195 = vmatpush.bf16.msra.mxu2 %v3031_v20 }
 0x454   : > { %v3399_v30 = vpop.permute.xlu0 %3398 }
 0x455   : > { %v3401_v17 = vunpack.i.h.bf16 %v3399_v30  ;;  %v3400_v22 = vunpack.i.l.bf16 %v3399_v30  ;;  %v3019_v30 = vor.u32 %v3155_v42, %v3018_v63 }
 0x457   : > { %2177 = vmatpush.bf16.msrb.mxu1 %v3019_v30 }
 0x462   : > { %v3394_v43 = vpop.permute.xlu1 %3393 }
 0x463   : > { %v3396_v48 = vunpack.i.h.bf16 %v3394_v43  ;;  %v3395_v51 = vunpack.i.l.bf16 %v3394_v43  ;;  %v3020_v43 = vld [vmem:[%s3861_s7 + $0x58] sm:$0xf0] }
 0x464   : > { %v3023_v44 = vor.u32 %v3154_v8, %v3020_v43 }
 0x465   : > { %v1861_v40 = vsel %vm1829_vm4, %v1859_v54, %v3395_v51  ;;  %v1862_v53 = vsel %vm1829_vm4, %v1860_v52, %v3396_v48  ;;  %v3010_v48 = vld [vmem:[%s3861_s7 + $0x40] sm:$0xf]  ;;  %v3153_v51 = vld [vmem:[%s3861_s7 + $0x44] sm:$0xf0]  ;;  %v3152_v54 = vld [vmem:[%s3861_s7 + $0x44] sm:$0xf] }
 0x466   : > { %v1863_v16 = vsel %vm1832_vm5, %v1861_v40, %v3400_v22  ;;  %v1864_v33 = vsel %vm1832_vm5, %v1862_v53, %v3401_v17  ;;  %2196 = vmatpush.bf16.msra.mxu2 %v3023_v44  ;;  %v3011_v52 = vor.u32 %v3153_v51, %v3010_v48  ;;  %v3012_v17 = vld [vmem:[%s3861_s7 + $0x48] sm:$0xf0]  ;;  %v3002_v40 = vld [vmem:[%s3861_s7 + $0x30] sm:$0xf]  ;;  %v3151_v53 = vld [vmem:[%s3861_s7 + $0x34] sm:$0xf0] }
 0x467   : > { %v1866_v45 = vpack.c.bf16 %v1864_v33, %v1863_v16  ;;  %v3015_v22 = vor.u32 %v3152_v54, %v3012_v17  ;;  %v3150_v16 = vld [vmem:[%s3861_s7 + $0x34] sm:$0xf]  ;;  %v3003_v33 = vor.u32 %v3151_v53, %v3002_v40 }
 0x468   : > { %2178 = vmatpush.bf16.msrb.mxu1 %v3011_v52 }
 0x469   : > { %1944 = vmatmul.bf16.gmra.mxu0 %v1866_v45  ;;  %v3004_v45 = vld [vmem:[%s3861_s7 + $0x38] sm:$0xf0] }
 0x46a   : > { %2197 = vmatpush.bf16.msra.mxu2 %v3015_v22 }
 0x46c   : > { %2179 = vmatpush.bf16.msrb.mxu1 %v3003_v33  ;;  %v3167_v33 = vld [vmem:[%s3903_s24 + $0x38] sm:$0xff] }
 0x46d   : > { %2353 = vmatpush.bf16.msrb.mxu3 %v3167_v33 }
 0x4ac   : > { %v1940_v23 = vpop.f32.mrf.mxu0 }
 0x4ad   : > { %v1950_v49 = vadd.f32 %v3489_v58, %v1940_v23  ;;  %v3007_v23 = vor.u32 %v3150_v16, %v3004_v45  ;;  %v2994_v58 = vld [vmem:[%s3861_s7 + $0x20] sm:$0xf]  ;;  %v3175_v45 = vld [vmem:[%s3903_s24 + $0x78] sm:$0xff] }
 0x4ae   : > { %2372 = vmatpush.bf16.msra.mxu0 %v3175_v45 }
 0x4af   : > { %1956 = vadd.xlane.f32.xlu2 %v1950_v49  ;;  %2198 = vmatpush.bf16.msra.mxu2 %v3007_v23 }
 0x4b4   : > { %v1942_v24 = vpop.f32.mrf.mxu0 }
 0x4b5   : > { %v1951_v59 = vadd.f32 %v3490_v0, %v1942_v24  ;;  %v3148_v24 = vld [vmem:[%s3861_s7 + $0x24] sm:$0xf] }
 0x4b7   : > { %1958 = vadd.xlane.f32.xlu1 %v1951_v59 }
 0x4e6   : > { %v1945_v62 = vpop.f32.mrf.mxu0 }
 0x4e7   : > { %v1952_v37 = vadd.f32 %v3491_v60, %v1945_v62 }
 0x4e9   : > { %1960 = vadd.xlane.f32.xlu0 %v1952_v37 }
 0x4ee   : > { %v1947_v50 = vpop.f32.mrf.mxu0 }
 0x4ef   : > { %v1953_v61 = vadd.f32 %v3492_v1, %v1947_v50  ;;  %v2986_v50 = vld [vmem:[%s3861_s7 + $0x10] sm:$0xf]  ;;  %v3147_v1 = vld [vmem:[%s3861_s7 + $0x14] sm:$0xf0] }
 0x4f0   : > { %v2987_v56 = vor.u32 %v3147_v1, %v2986_v50 }
 0x4f1   : > { %1962 = vadd.xlane.f32.xlu2 %v1953_v61 }
 0x522   : > { %v1957_v32 = vpop.xlane.xlu2 %1956 }
 0x523   : > { %v1971_v10 = vmul.f32 %v4272_v47, %v1957_v32  ;;  %v3144_v32 = vld [vmem:[%s3861_s7 + $0x4] sm:$0xf] }
 0x525   : > { %v4275_v38 = vsub.f32 %v1950_v49, %v1971_v10  ;;  %v3149_v49 = vld [vmem:[%s3861_s7 + $0x24] sm:$0xf0]  ;;  %v2980_v10 = vld [vmem:[%s3861_s7 + $0x8] sm:$0xf0] }
 0x526   : > { %v2995_v0 = vor.u32 %v3149_v49, %v2994_v58  ;;  %v3166_v58 = vld [vmem:[%s3903_s24 + $0x30] sm:$0xff] }
 0x527   : > { %v1979_v29 = vmul.f32 %v4275_v38, %v4275_v38  ;;  %v3174_v49 = vld [vmem:[%s3903_s24 + $0x70] sm:$0xff]  ;;  %2354 = vmatpush.bf16.msrb.mxu3 %v3166_v58 }
 0x528   : > { %2180 = vmatpush.bf16.msrb.mxu1 %v2995_v0  ;;  %2373 = vmatpush.bf16.msra.mxu0 %v3174_v49 }
 0x529   : > { %1983 = vadd.xlane.f32.xlu1 %v1979_v29  ;;  %v2979_v29 = vor.u32 %v3145_v5, %v2978_v3 }
 0x52a   : > { %v1959_v35 = vpop.xlane.xlu1 %1958 }
 0x52b   : > { %v1972_v21 = vmul.f32 %v4272_v47, %v1959_v35  ;;  %v2983_v35 = vor.u32 %v3144_v32, %v2980_v10 }
 0x52c   : > { %2181 = vmatpush.bf16.msrb.mxu1 %v2987_v56 }
 0x52d   : > { %v4280_v12 = vsub.f32 %v1951_v59, %v1972_v21  ;;  %v2996_v59 = vld [vmem:[%s3861_s7 + $0x28] sm:$0xf0] }
 0x52e   : > { %v2999_v60 = vor.u32 %v3148_v24, %v2996_v59  ;;  %v3165_v59 = vld [vmem:[%s3903_s24 + $0x28] sm:$0xff] }
 0x52f   : > { %v1980_v41 = vmul.f32 %v4280_v12, %v4280_v12  ;;  %2355 = vmatpush.bf16.msrb.mxu3 %v3165_v59 }
 0x530   : > { %2199 = vmatpush.bf16.msra.mxu2 %v2999_v60  ;;  %2182 = vmatpush.bf16.msrb.mxu1 %v2979_v29 }
 0x531   : > { %1985 = vadd.xlane.f32.xlu0 %v1980_v41 }
 0x55c   : > { %v1961_v57 = vpop.xlane.xlu0 %1960 }
 0x55d   : > { %v1973_v34 = vmul.f32 %v4272_v47, %v1961_v57 }
 0x55f   : > { %v4285_v25 = vsub.f32 %v1952_v37, %v1973_v34 }
 0x561   : > { %v1981_v13 = vmul.f32 %v4285_v25, %v4285_v25 }
 0x563   : > { %1987 = vadd.xlane.f32.xlu2 %v1981_v13 }
 0x564   : > { %v1963_v14 = vpop.xlane.xlu2 %1962 }
 0x565   : > { %v1974_v15 = vmul.f32 %v4272_v47, %v1963_v14 }
 0x567   : > { %v4290_v11 = vsub.f32 %v1953_v61, %v1974_v15  ;;  %v3146_v61 = vld [vmem:[%s3861_s7 + $0x14] sm:$0xf] }
 0x568   : > { %v2991_v7 = vor.u32 %v3146_v61, %v2988_v2  ;;  %v3164_v61 = vld [vmem:[%s3903_s24 + $0x20] sm:$0xff] }
 0x569   : > { %v1982_v18 = vmul.f32 %v4290_v11, %v4290_v11  ;;  %2356 = vmatpush.bf16.msrb.mxu3 %v3164_v61 }
 0x56a   : > { %2200 = vmatpush.bf16.msra.mxu2 %v2991_v7 }
 0x56b   : > { %1989 = vadd.xlane.f32.xlu1 %v1982_v18 }
 0x56e   : > { %2201 = vmatpush.bf16.msra.mxu2 %v2983_v35 }
 0x59c   : > { %v1984_v62 = vpop.xlane.xlu1 %1983 }
 0x59d   : > { %v1991_v37 = vmul.f32 %v1984_v62, %v4272_v47  ;;  %v3173_v62 = vld [vmem:[%s3903_s24 + $0x68] sm:$0xff] }
 0x59e   : > { %2374 = vmatpush.bf16.msra.mxu0 %v3173_v62 }
 0x59f   : > { %v1995_v55 = vadd.f32 1e-05, %v1991_v37 }
 0x5a1   : > { %3473 = vrsqrt.f32 %v1995_v55  ;;  %vm2005_vm8 = vweird.f32 %v1995_v55 }
 0x5a4   : > { %v1986_v21 = vpop.xlane.xlu0 %1985 }
 0x5a5   : > { %v1992_v41 = vmul.f32 %v1986_v21, %v4272_v47 }
 0x5a7   : > { %v3474_v57 = vpop.eup %3473  ;;  %v1996_v34 = vadd.f32 1e-05, %v1992_v41 }
 0x5a8   : > { %v2000_v13 = vmul.f32 %v3474_v57, %v1995_v55  ;;  %vm2006_vm7 = vweird.f32 %v3474_v57 }
 0x5a9   : > { %3475 = vrsqrt.f32 %v1996_v34  ;;  %vm2007_vm9 = vmor %vm2005_vm8, %vm2006_vm7  ;;  %vm2015_vm11 = vweird.f32 %v1996_v34 }
 0x5aa   : > { %v2001_v14 = vmul.f32 %v3474_v57, %v2000_v13 }
 0x5ac   : > { %v2002_v15 = vmul.f32 0.5, %v2001_v14  ;;  %v3163_v14 = vld [vmem:[%s3903_s24 + $0x18] sm:$0xff] }
 0x5ad   : > { %2357 = vmatpush.bf16.msrb.mxu3 %v3163_v14 }
 0x5ae   : > { %v2003_v18 = vsub.f32 1.5, %v2002_v15  ;;  %v3172_v15 = vld [vmem:[%s3903_s24 + $0x60] sm:$0xff] }
 0x5af   : > { %v3476_v19 = vpop.eup %3475  ;;  %2375 = vmatpush.bf16.msra.mxu0 %v3172_v15 }
 0x5b0   : > { %v2004_v26 = vmul.f32 %v3474_v57, %v2003_v18  ;;  %v2010_v27 = vmul.f32 %v3476_v19, %v1996_v34  ;;  %vm2016_vm10 = vweird.f32 %v3476_v19  ;;  %v3162_v18 = vld [vmem:[%s3903_s24 + $0x10] sm:$0xff] }
 0x5b1   : > { %vm2017_vm12 = vmor %vm2015_vm11, %vm2016_vm10  ;;  %2358 = vmatpush.bf16.msrb.mxu3 %v3162_v18 }
 0x5b2   : > { %v2008_v46 = vsel %vm2007_vm9, %v3474_v57, %v2004_v26  ;;  %v2011_v28 = vmul.f32 %v3476_v19, %v2010_v27  ;;  %v3161_v26 = vld [vmem:[%s3903_s24 + $0x8] sm:$0xff]  ;;  %v3170_v27 = vld [vmem:[%s3903_s24 + $0x50] sm:$0xff] }
 0x5b3   : > { %v2039_v39 = vmul.f32 %v2008_v46, %v4275_v38  ;;  %v3160_v46 = vld [vmem:[%s3903_s24] sm:$0xff] }
 0x5b4   : > { %v2012_v9 = vmul.f32 0.5, %v2011_v28  ;;  %v3169_v28 = vld [vmem:[%s3903_s24 + $0x48] sm:$0xff] }
 0x5b5   : > { %v2046_v36 = vmul.f32 %v4333_v31, %v2039_v39  ;;  %2359 = vmatpush.bf16.msrb.mxu3 %v3161_v26  ;;  %v2077_v39 = vld [vmem:[%s3893_s1] sm:$0x3] }
 0x5b6   : > { %v2013_v4 = vsub.f32 1.5, %v2012_v9 }
 0x5b7   : > { %v4346_v8 = vadd.f32 %v4342_v6, %v2046_v36 }
 0x5b8   : > { %v2014_v20 = vmul.f32 %v3476_v19, %v2013_v4  ;;  %v2079_v4 = vperm.slane %v2077_v39, 0 }
 0x5b9   : > { %v2057_v43 = vpack.c.bf16 %v4346_v8, %v4346_v8  ;;  %2360 = vmatpush.bf16.msrb.mxu3 %v3160_v46 }
 0x5ba   : > { %v2018_v63 = vsel %vm2017_vm12, %v3476_v19, %v2014_v20  ;;  %v3171_v19 = vld [vmem:[%s3903_s24 + $0x58] sm:$0xff] }
 0x5bb   : > { %v2040_v42 = vmul.f32 %v2018_v63, %v4280_v12  ;;  %v2087_v48 = vunpack.c.l.b16 %v2057_v43  ;;  %2376 = vmatpush.bf16.msra.mxu0 %v3171_v19  ;;  %v2080_v63 = vperm.slane %v2077_v39, 1 }
 0x5bd   : > { %v2047_v38 = vmul.f32 %v4333_v31, %v2040_v42 }
 0x5bf   : > { %v4350_v30 = vadd.f32 %v4342_v6, %v2047_v38  ;;  %2377 = vmatpush.bf16.msra.mxu0 %v3170_v27 }
 0x5c1   : > { %v2058_v44 = vpack.c.bf16 %v4350_v30, %v4350_v30 }
 0x5c3   : > { %v2088_v51 = vunpack.c.l.b16 %v2058_v44  ;;  %2378 = vmatpush.bf16.msra.mxu0 %v3169_v28 }
 0x5c5   : > { %v2091_v54 = vpack.c.b16 %v2088_v51, %v2087_v48 }
 0x5c7   : > { %2183 = vmatmul.bf16.vlgmr.msrb.gmra.mxu1 %v2091_v54  ;;  %2202 = vmatmul.bf16.vlgmr.msra.gmra.mxu2 %v2091_v54 }
 0x5d6   : > { %v1988_v12 = vpop.xlane.xlu2 %1987 }
 0x5d7   : > { %v1993_v52 = vmul.f32 %v1988_v12, %v4272_v47 }
 0x5d9   : > { %v1997_v17 = vadd.f32 1e-05, %v1993_v52 }
 0x5db   : > { %3477 = vrsqrt.f32 %v1997_v17  ;;  %vm2025_vm14 = vweird.f32 %v1997_v17 }
 0x5de   : > { %v1990_v22 = vpop.xlane.xlu1 %1989 }
 0x5df   : > { %v1994_v40 = vmul.f32 %v1990_v22, %v4272_v47 }
 0x5e1   : > { %v3478_v53 = vpop.eup %3477  ;;  %v1998_v16 = vadd.f32 1e-05, %v1994_v40 }
 0x5e2   : > { %v2020_v23 = vmul.f32 %v3478_v53, %v1997_v17  ;;  %vm2026_vm13 = vweird.f32 %v3478_v53 }
 0x5e3   : > { %3479 = vrsqrt.f32 %v1998_v16  ;;  %vm2027_vm15 = vmor %vm2025_vm14, %vm2026_vm13  ;;  %vm2035_vm1 = vweird.f32 %v1998_v16 }
 0x5e4   : > { %v2021_v24 = vmul.f32 %v3478_v53, %v2020_v23 }
 0x5e6   : > { %v2022_v0 = vmul.f32 0.5, %v2021_v24 }
 0x5e8   : > { %v2023_v60 = vsub.f32 1.5, %v2022_v0 }
 0x5e9   : > { %v3480_v37 = vpop.eup %3479 }
 0x5ea   : > { %v2024_v50 = vmul.f32 %v3478_v53, %v2023_v60  ;;  %v2030_v1 = vmul.f32 %v3480_v37, %v1998_v16  ;;  %vm2036_vm0 = vweird.f32 %v3480_v37 }
 0x5eb   : > { %vm2037_vm2 = vmor %vm2035_vm1, %vm2036_vm0 }
 0x5ec   : > { %v2028_v56 = vsel %vm2027_vm15, %v3478_v53, %v2024_v50  ;;  %v2031_v2 = vmul.f32 %v3480_v37, %v2030_v1 }
 0x5ed   : > { %v2041_v3 = vmul.f32 %v2028_v56, %v4285_v25 }
 0x5ee   : > { %v2032_v5 = vmul.f32 0.5, %v2031_v2 }
 0x5ef   : > { %v2048_v7 = vmul.f32 %v4333_v31, %v2041_v3 }
 0x5f0   : > { %v2033_v55 = vsub.f32 1.5, %v2032_v5 }
 0x5f1   : > { %v4369_v35 = vadd.f32 %v4342_v6, %v2048_v7 }
 0x5f2   : > { %v2034_v32 = vmul.f32 %v3480_v37, %v2033_v55 }
 0x5f3   : > { %v2059_v41 = vpack.c.bf16 %v4369_v35, %v4369_v35 }
 0x5f4   : > { %v2038_v10 = vsel %vm2037_vm2, %v3480_v37, %v2034_v32  ;;  %v3404_v37 = vld [vmem:[%s672_s19] ss:$0 sm:$0xff] }
 0x5f5   : > { %v2042_v29 = vmul.f32 %v2038_v10, %v4290_v11  ;;  %v2089_v34 = vunpack.c.l.b16 %v2059_v41 }
 0x5f7   : > { %v2049_v25 = vmul.f32 %v4333_v31, %v2042_v29  ;;  %v3168_v31 = vld [vmem:[%s3903_s24 + $0x40] sm:$0xff] }
 0x5f8   : > { %2379 = vmatpush.bf16.msra.mxu0 %v3168_v31 }
 0x5f9   : > { %v4373_v21 = vadd.f32 %v4342_v6, %v2049_v25 }
 0x5fb   : > { %v2060_v57 = vpack.c.bf16 %v4373_v21, %v4373_v21 }
 0x5fd   : > { %v2090_v13 = vunpack.c.l.b16 %v2060_v57 }
 0x5ff   : > { %v2092_v11 = vpack.c.b16 %v2090_v13, %v2089_v34 }
 0x601   : > { %2188 = vmatmul.bf16.gmra.mxu1 %v2092_v11  ;;  %2207 = vmatmul.bf16.gmra.mxu2 %v2092_v11 }
 0x644   : > { %v2184_v9 = vpop.f32.mrf.mxu1 }
 0x645   : > { %v2185_v6 = vadd.f32 %v2184_v9, %v2079_v4 }
 0x647   : > { %v2213_v38 = vmax.f32 %v2185_v6, 0.0 }
 0x64a   : > { %v2203_v36 = vpop.f32.mrf.mxu2 }
 0x64b   : > { %v2204_v44 = vadd.f32 %v2203_v36, %v2080_v63 }
 0x64c   : > { %v2186_v20 = vpop.f32.mrf.mxu1 }
 0x64d   : > { %v2187_v42 = vadd.f32 %v2186_v20, %v2079_v4  ;;  %v2214_v12 = vmax.f32 %v2204_v44, 0.0 }
 0x64f   : > { %v2215_v43 = vmax.f32 %v2187_v42, 0.0 }
 0x651   : > { %v2221_v48 = vpack.c.bf16 %v2215_v43, %v2213_v38 }
 0x652   : > { %v2205_v51 = vpop.f32.mrf.mxu2 }
 0x653   : > { %v2206_v54 = vadd.f32 %v2205_v51, %v2080_v63  ;;  %2361 = vmatmul.bf16.vlgmr.msrb.gmra.mxu3 %v2221_v48 }
 0x655   : > { %v2216_v52 = vmax.f32 %v2206_v54, 0.0 }
 0x657   : > { %v2222_v17 = vpack.c.bf16 %v2216_v52, %v2214_v12 }
 0x659   : > { %2380 = vmatmul.bf16.vlgmr.msra.gmra.mxu0 %v2222_v17 }
 0x67e   : > { %v2189_v22 = vpop.f32.mrf.mxu1 }
 0x67f   : > { %v2190_v53 = vadd.f32 %v2189_v22, %v2079_v4 }
 0x681   : > { %v2217_v45 = vmax.f32 %v2190_v53, 0.0  ;;  %v3405_v53 = vld [vmem:[%s675_s22] ss:$0 sm:$0xff] }
 0x684   : > { %v2208_v40 = vpop.f32.mrf.mxu2 }
 0x685   : > { %v2209_v58 = vadd.f32 %v2208_v40, %v2080_v63 }
 0x686   : > { %v2191_v16 = vpop.f32.mrf.mxu1 }
 0x687   : > { %v2192_v33 = vadd.f32 %v2191_v16, %v2079_v4  ;;  %v2218_v59 = vmax.f32 %v2209_v58, 0.0 }
 0x689   : > { %v2219_v23 = vmax.f32 %v2192_v33, 0.0 }
 0x68b   : > { %v2223_v49 = vpack.c.bf16 %v2219_v23, %v2217_v45  ;;  %v3406_v45 = vld [vmem:[%s678_s2] ss:$0 sm:$0xff] }
 0x68c   : > { %v2210_v24 = vpop.f32.mrf.mxu2 }
 0x68d   : > { %v2211_v0 = vadd.f32 %v2210_v24, %v2080_v63  ;;  %2366 = vmatmul.bf16.gmra.mxu3 %v2223_v49 }
 0x68f   : > { %v2220_v62 = vmax.f32 %v2211_v0, 0.0 }
 0x691   : > { %v2224_v60 = vpack.c.bf16 %v2220_v62, %v2218_v59 }
 0x693   : > { %2385 = vmatmul.bf16.gmra.mxu0 %v2224_v60 }
 0x6d6   : > { %v2362_v50 = vpop.f32.mrf.mxu3  ;;  %v2381_v1 = vpop.f32.mrf.mxu0 }
 0x6d7   : > { %v2382_v61 = vadd.f32 %v2381_v1, %v2362_v50 }
 0x6d9   : > { %v2395_v56 = vadd.f32 %v3404_v37, %v2382_v61 }
 0x6db   : > { %v2399_v2 = vadd.f32 %v2395_v56, %v4346_v8 }
 0x6dd   : > { %2405 = vadd.xlane.f32.xlu0 %v2399_v2 }
 0x6de   : > { %v2364_v3 = vpop.f32.mrf.mxu3  ;;  %v2383_v5 = vpop.f32.mrf.mxu0 }
 0x6df   : > { %v2384_v55 = vadd.f32 %v2383_v5, %v2364_v3 }
 0x6e1   : > { %v2396_v7 = vadd.f32 %v3404_v37, %v2384_v55 }
 0x6e3   : > { %v2400_v32 = vadd.f32 %v2396_v7, %v4350_v30 }
 0x6e5   : > { %2407 = vadd.xlane.f32.xlu2 %v2400_v32 }
 0x710   : > { %v2367_v10 = vpop.f32.mrf.mxu3  ;;  %v2386_v29 = vpop.f32.mrf.mxu0 }
 0x711   : > { %v2387_v25 = vadd.f32 %v2386_v29, %v2367_v10 }
 0x713   : > { %v2397_v41 = vadd.f32 %v3404_v37, %v2387_v25 }
 0x715   : > { %v2401_v57 = vadd.f32 %v2397_v41, %v4369_v35 }
 0x717   : > { %2409 = vadd.xlane.f32.xlu1 %v2401_v57 }
 0x718   : > { %v2369_v34 = vpop.f32.mrf.mxu3  ;;  %v2388_v13 = vpop.f32.mrf.mxu0 }
 0x719   : > { %v2389_v11 = vadd.f32 %v2388_v13, %v2369_v34 }
 0x71b   : > { %v2398_v14 = vadd.f32 %v3404_v37, %v2389_v11 }
 0x71d   : > { %v2402_v8 = vadd.f32 %v2398_v14, %v4373_v21 }
 0x71f   : > { %2411 = vadd.xlane.f32.xlu0 %v2402_v8 }
 0x750   : > { %v2406_v15 = vpop.xlane.xlu0 %2405 }
 0x751   : > { %v2413_v18 = vmul.f32 %v2406_v15, %v4272_v47 }
 0x753   : > { %v2417_v19 = vsub.f32 %v2399_v2, %v2413_v18 }
 0x755   : > { %v2421_v30 = vmul.f32 %v2417_v19, %v2417_v19 }
 0x757   : > { %2425 = vadd.xlane.f32.xlu2 %v2421_v30 }
 0x758   : > { %v2408_v26 = vpop.xlane.xlu2 %2407 }
 0x759   : > { %v2414_v27 = vmul.f32 %v2408_v26, %v4272_v47 }
 0x75b   : > { %v2418_v46 = vsub.f32 %v2400_v32, %v2414_v27 }
 0x75d   : > { %v2422_v28 = vmul.f32 %v2418_v46, %v2418_v46 }
 0x75f   : > { %2427 = vadd.xlane.f32.xlu1 %v2422_v28 }
 0x78a   : > { %v2410_v35 = vpop.xlane.xlu1 %2409 }
 0x78b   : > { %v2415_v31 = vmul.f32 %v2410_v35, %v4272_v47 }
 0x78d   : > { %v4401_v39 = vsub.f32 %v2401_v57, %v2415_v31 }
 0x78f   : > { %v2423_v21 = vmul.f32 %v4401_v39, %v4401_v39 }
 0x791   : > { %2429 = vadd.xlane.f32.xlu0 %v2423_v21 }
 0x792   : > { %v2412_v9 = vpop.xlane.xlu0 %2411 }
 0x793   : > { %v2416_v4 = vmul.f32 %v2412_v9, %v4272_v47 }
 0x795   : > { %v4406_v36 = vsub.f32 %v2402_v8, %v2416_v4 }
 0x797   : > { %v2424_v6 = vmul.f32 %v4406_v36, %v4406_v36 }
 0x799   : > { %2431 = vadd.xlane.f32.xlu2 %v2424_v6 }
 0x7ca   : > { %v2426_v20 = vpop.xlane.xlu2 %2425 }
 0x7cb   : > { %v2433_v63 = vmul.f32 %v2426_v20, %v4272_v47 }
 0x7cd   : > { %v2437_v42 = vadd.f32 1e-05, %v2433_v63 }
 0x7cf   : > { %3481 = vrsqrt.f32 %v2437_v42  ;;  %vm2447_vm4 = vweird.f32 %v2437_v42 }
 0x7d2   : > { %v2428_v38 = vpop.xlane.xlu1 %2427 }
 0x7d3   : > { %v2434_v43 = vmul.f32 %v2428_v38, %v4272_v47 }
 0x7d5   : > { %v3482_v44 = vpop.eup %3481  ;;  %v2438_v48 = vadd.f32 1e-05, %v2434_v43 }
 0x7d6   : > { %v2442_v51 = vmul.f32 %v3482_v44, %v2437_v42  ;;  %vm2448_vm3 = vweird.f32 %v3482_v44 }
 0x7d7   : > { %3483 = vrsqrt.f32 %v2438_v48  ;;  %vm2449_vm5 = vmor %vm2447_vm4, %vm2448_vm3  ;;  %vm2457_vm7 = vweird.f32 %v2438_v48 }
 0x7d8   : > { %v2443_v54 = vmul.f32 %v3482_v44, %v2442_v51 }
 0x7da   : > { %v2444_v12 = vmul.f32 0.5, %v2443_v54 }
 0x7dc   : > { %v2445_v52 = vsub.f32 1.5, %v2444_v12 }
 0x7dd   : > { %v3484_v17 = vpop.eup %3483 }
 0x7de   : > { %v2446_v22 = vmul.f32 %v3482_v44, %v2445_v52  ;;  %v2452_v40 = vmul.f32 %v3484_v17, %v2438_v48  ;;  %vm2458_vm6 = vweird.f32 %v3484_v17 }
 0x7df   : > { %vm2459_vm8 = vmor %vm2457_vm7, %vm2458_vm6 }
 0x7e0   : > { %v2450_v16 = vsel %vm2449_vm5, %v3482_v44, %v2446_v22  ;;  %v2453_v33 = vmul.f32 %v3484_v17, %v2452_v40 }
 0x7e1   : > { %v2481_v23 = vmul.f32 %v2450_v16, %v2417_v19 }
 0x7e2   : > { %v2454_v58 = vmul.f32 0.5, %v2453_v33 }
 0x7e3   : > { %v2488_v49 = vmul.f32 %v3405_v53, %v2481_v23 }
 0x7e4   : > { %v2455_v24 = vsub.f32 1.5, %v2454_v58 }
 0x7e5   : > { %v2495_v0 = vadd.f32 %v3406_v45, %v2488_v49 }
 0x7e6   : > { %v2456_v59 = vmul.f32 %v3484_v17, %v2455_v24 }
 0x7e7   : > { %2499 = vst [vmem:[#allocation2 + $0x10] sm:$0xff] %v2495_v0 }
 0x7e8   : > { %v2460_v62 = vsel %vm2459_vm8, %v3484_v17, %v2456_v59 }
 0x7e9   : > { %v2482_v60 = vmul.f32 %v2460_v62, %v2418_v46 }
 0x7eb   : > { %v2489_v37 = vmul.f32 %v3405_v53, %v2482_v60 }
 0x7ed   : > { %v2496_v50 = vadd.f32 %v3406_v45, %v2489_v37 }
 0x7ef   : > { %2500 = vst [vmem:[#allocation2] sm:$0xff] %v2496_v50 }
 0x804   : > { %v2430_v1 = vpop.xlane.xlu0 %2429 }
 0x805   : > { %v2435_v61 = vmul.f32 %v2430_v1, %v4272_v47 }
 0x807   : > { %v2439_v56 = vadd.f32 1e-05, %v2435_v61 }
 0x809   : > { %3485 = vrsqrt.f32 %v2439_v56  ;;  %vm2467_vm10 = vweird.f32 %v2439_v56 }
 0x80c   : > { %v2432_v2 = vpop.xlane.xlu2 %2431 }
 0x80d   : > { %v2436_v3 = vmul.f32 %v2432_v2, %v4272_v47 }
 0x80f   : > { %v3486_v5 = vpop.eup %3485  ;;  %v2440_v55 = vadd.f32 1e-05, %v2436_v3 }
 0x810   : > { %v2462_v7 = vmul.f32 %v3486_v5, %v2439_v56  ;;  %vm2468_vm9 = vweird.f32 %v3486_v5 }
 0x811   : > { %3487 = vrsqrt.f32 %v2440_v55  ;;  %vm2469_vm11 = vmor %vm2467_vm10, %vm2468_vm9  ;;  %vm2477_vm13 = vweird.f32 %v2440_v55 }
 0x812   : > { %v2463_v32 = vmul.f32 %v3486_v5, %v2462_v7 }
 0x814   : > { %v2464_v10 = vmul.f32 0.5, %v2463_v32 }
 0x816   : > { %v2465_v29 = vsub.f32 1.5, %v2464_v10 }
 0x817   : > { %v3488_v25 = vpop.eup %3487 }
 0x818   : > { %v2466_v41 = vmul.f32 %v3486_v5, %v2465_v29  ;;  %v2472_v57 = vmul.f32 %v3488_v25, %v2440_v55  ;;  %vm2478_vm12 = vweird.f32 %v3488_v25 }
 0x819   : > { %vm2479_vm14 = vmor %vm2477_vm13, %vm2478_vm12 }
 0x81a   : > { %v2470_v34 = vsel %vm2469_vm11, %v3486_v5, %v2466_v41  ;;  %v2473_v13 = vmul.f32 %v3488_v25, %v2472_v57 }
 0x81b   : > { %v2483_v11 = vmul.f32 %v2470_v34, %v4401_v39 }
 0x81c   : > { %v2474_v14 = vmul.f32 0.5, %v2473_v13 }
 0x81d   : > { %v2490_v8 = vmul.f32 %v3405_v53, %v2483_v11 }
 0x81e   : > { %v2475_v15 = vsub.f32 1.5, %v2474_v14 }
 0x81f   : > { %v2497_v18 = vadd.f32 %v3406_v45, %v2490_v8 }
 0x820   : > { %v2476_v19 = vmul.f32 %v3488_v25, %v2475_v15 }
 0x821   : > { %2501 = vst [vmem:[#allocation2 + $0x18] sm:$0xff] %v2497_v18 }
 0x822   : > { %v2480_v30 = vsel %vm2479_vm14, %v3488_v25, %v2476_v19 }
 0x823   : > { %v2484_v26 = vmul.f32 %v2480_v30, %v4406_v36 }
 0x825   : > { %v2491_v27 = vmul.f32 %v3405_v53, %v2484_v26  ;;  %2506 = sbr.rel (%p3104_p1) target bundleno = 2368 (0x940), region = 92 }
 0x827   : > { %v2498_v46 = vadd.f32 %v3406_v45, %v2491_v27 }
 0x829   : > { %2502 = vst [vmem:[#allocation2 + $0x8] sm:$0xff] %v2498_v46 }
 0x82a   : > { %2513 = vadd.xlane.f32.xlu1 %v2497_v18  ;;  %2509 = vadd.xlane.f32.xlu0 %v2495_v0  ;;  %v3493_v57 = vld [vmem:[%s4531_s27] ss:$0 sm:$0xff] }
 0x832   : > { %2515 = vadd.xlane.f32.xlu1 %v2498_v46  ;;  %2511 = vadd.xlane.f32.xlu0 %v2496_v50 }
 0x89d   : > { %v2514_v28 = vpop.xlane.xlu1 %2513  ;;  %v2510_v35 = vpop.xlane.xlu0 %2509 }
 0x89e   : > { %v2519_v31 = vmul.f32 %v2514_v28, %v4272_v47  ;;  %v2517_v39 = vmul.f32 %v2510_v35, %v4272_v47 }
 0x8a0   : > { %v4429_v21 = vsub.f32 %v2497_v18, %v2519_v31  ;;  %v4431_v9 = vsub.f32 %v2495_v0, %v2517_v39  ;;  %v3494_v18 = vld [vmem:[%s4532_s20] ss:$0 sm:$0xff] }
 0x8a2   : > { %v2527_v4 = vmul.f32 %v4429_v21, %v4429_v21  ;;  %v2525_v36 = vmul.f32 %v4431_v9, %v4431_v9 }
 0x8a4   : > { %2533 = vadd.xlane.f32.xlu0 %v2527_v4  ;;  %2529 = vadd.xlane.f32.xlu2 %v2525_v36 }
 0x8a5   : > { %v2516_v6 = vpop.xlane.xlu1 %2515  ;;  %v2512_v20 = vpop.xlane.xlu0 %2511 }
 0x8a6   : > { %v2520_v63 = vmul.f32 %v2516_v6, %v4272_v47  ;;  %v2518_v42 = vmul.f32 %v2512_v20, %v4272_v47 }
 0x8a8   : > { %v4439_v38 = vsub.f32 %v2498_v46, %v2520_v63  ;;  %v4441_v43 = vsub.f32 %v2496_v50, %v2518_v42 }
 0x8aa   : > { %v2528_v44 = vmul.f32 %v4439_v38, %v4439_v38  ;;  %v2526_v48 = vmul.f32 %v4441_v43, %v4441_v43 }
 0x8ac   : > { %2535 = vadd.xlane.f32.xlu1 %v2528_v44  ;;  %2531 = vadd.xlane.f32.xlu2 %v2526_v48 }
 0x917   : > { %v2530_v51 = vpop.xlane.xlu2 %2529  ;;  %v2534_v54 = vpop.xlane.xlu0 %2533 }
 0x918   : > { %v2537_v12 = vmul.f32 %v2530_v51, %v4272_v47  ;;  %v2539_v52 = vmul.f32 %v2534_v54, %v4272_v47 }
 0x91a   : > { %v2541_v17 = vadd.f32 1e-05, %v2537_v12  ;;  %v2543_v22 = vadd.f32 1e-05, %v2539_v52 }
 0x91c   : > { %3495 = vrsqrt.f32 %v2541_v17  ;;  %vm2571_vm1 = vweird.f32 %v2543_v22  ;;  %vm2551_vm2 = vweird.f32 %v2541_v17 }
 0x91d   : > { %3497 = vrsqrt.f32 %v2543_v22 }
 0x91f   : > { %v2536_v40 = vpop.xlane.xlu1 %2535  ;;  %v2532_v53 = vpop.xlane.xlu2 %2531 }
 0x920   : > { %v2540_v16 = vmul.f32 %v2536_v40, %v4272_v47  ;;  %v2538_v33 = vmul.f32 %v2532_v53, %v4272_v47 }
 0x922   : > { %v3496_v45 = vpop.eup %3495  ;;  %v2544_v23 = vadd.f32 1e-05, %v2540_v16  ;;  %v2542_v58 = vadd.f32 1e-05, %v2538_v33 }
 0x923   : > { %v3498_v49 = vpop.eup %3497  ;;  %v2546_v24 = vmul.f32 %v3496_v45, %v2541_v17  ;;  %vm2552_vm0 = vweird.f32 %v3496_v45 }
 0x924   : > { %v2566_v0 = vmul.f32 %v3498_v49, %v2543_v22  ;;  %3499 = vrsqrt.f32 %v2544_v23  ;;  %vm2572_vm15 = vweird.f32 %v3498_v49  ;;  %vm2553_vm4 = vmor %vm2551_vm2, %vm2552_vm0  ;;  %vm2581_vm7 = vweird.f32 %v2544_v23 }
 0x925   : > { %v2547_v59 = vmul.f32 %v3496_v45, %v2546_v24  ;;  %3501 = vrsqrt.f32 %v2542_v58  ;;  %vm2573_vm3 = vmor %vm2571_vm1, %vm2572_vm15  ;;  %vm2561_vm9 = vweird.f32 %v2542_v58 }
 0x926   : > { %v2567_v62 = vmul.f32 %v3498_v49, %v2566_v0 }
 0x927   : > { %v2548_v60 = vmul.f32 0.5, %v2547_v59 }
 0x928   : > { %v2568_v37 = vmul.f32 0.5, %v2567_v62 }
 0x929   : > { %v2549_v50 = vsub.f32 1.5, %v2548_v60 }
 0x92a   : > { %v3500_v1 = vpop.eup %3499  ;;  %v2569_v61 = vsub.f32 1.5, %v2568_v37 }
 0x92b   : > { %v3502_v56 = vpop.eup %3501  ;;  %v2576_v2 = vmul.f32 %v3500_v1, %v2544_v23  ;;  %v2550_v3 = vmul.f32 %v3496_v45, %v2549_v50  ;;  %vm2582_vm5 = vweird.f32 %v3500_v1 }
 0x92c   : > { %v2570_v47 = vmul.f32 %v3498_v49, %v2569_v61  ;;  %v2556_v5 = vmul.f32 %v3502_v56, %v2542_v58  ;;  %vm2562_vm6 = vweird.f32 %v3502_v56  ;;  %vm2583_vm8 = vmor %vm2581_vm7, %vm2582_vm5 }
 0x92d   : > { %v2577_v55 = vmul.f32 %v3500_v1, %v2576_v2  ;;  %v2554_v29 = vsel %vm2553_vm4, %v3496_v45, %v2550_v3  ;;  %vm2563_vm10 = vmor %vm2561_vm9, %vm2562_vm6 }
 0x92e   : > { %v2557_v7 = vmul.f32 %v3502_v56, %v2556_v5  ;;  %v2574_v32 = vsel %vm2573_vm3, %v3498_v49, %v2570_v47  ;;  %v2585_v11 = vmul.f32 %v2554_v29, %v4431_v9 }
 0x92f   : > { %v2578_v10 = vmul.f32 0.5, %v2577_v55  ;;  %v2587_v34 = vmul.f32 %v2574_v32, %v4429_v21 }
 0x930   : > { %v2558_v25 = vmul.f32 0.5, %v2557_v7  ;;  %v2592_v27 = vmul.f32 %v3493_v57, %v2585_v11 }
 0x931   : > { %v2579_v41 = vsub.f32 1.5, %v2578_v10  ;;  %v2594_v19 = vmul.f32 %v3493_v57, %v2587_v34 }
 0x932   : > { %v2559_v13 = vsub.f32 1.5, %v2558_v25  ;;  %v2599_v21 = vadd.f32 %v3494_v18, %v2592_v27 }
 0x933   : > { %v2580_v14 = vmul.f32 %v3500_v1, %v2579_v41  ;;  %v2601_v31 = vadd.f32 %v3494_v18, %v2594_v19 }
 0x934   : > { %v2560_v8 = vmul.f32 %v3502_v56, %v2559_v13 }
 0x935   : > { %v2584_v15 = vsel %vm2583_vm8, %v3500_v1, %v2580_v14 }
 0x936   : > { %v2588_v30 = vmul.f32 %v2584_v15, %v4439_v38  ;;  %v2564_v26 = vsel %vm2563_vm10, %v3502_v56, %v2560_v8 }
 0x937   : > { %v2586_v46 = vmul.f32 %v2564_v26, %v4441_v43 }
 0x938   : > { %v2595_v28 = vmul.f32 %v3493_v57, %v2588_v30 }
 0x939   : > { %v2593_v35 = vmul.f32 %v3493_v57, %v2586_v46 }
 0x93a   : > { %v2602_v39 = vadd.f32 %v3494_v18, %v2595_v28 }
 0x93b   : > { %v2600_v9 = vadd.f32 %v3494_v18, %v2593_v35 }
 0x93c   : > { %v3192_v4 = vpack.c.bf16 %v2602_v39, %v2601_v31 }
 0x93d   : > { %v3187_v36 = vpack.c.bf16 %v2600_v9, %v2599_v21 }
 0x93e   : > { %3195 = vst [vmem:[#allocation9 + $0x8] sm:$0xff] %v3192_v4  }
 0x93f   : > { %3188 = vst [vmem:[#allocation9] sm:$0xff] %v3187_v36  }
 0x940 PF: > { %p3220_p2 = scmp.eq.s32.totalorder %s3792_s14, 1  ;;  %s4533_s0 = sld [smem:[#allocation25_spill]] }
 0x941   : > { %s3691_s23 = smov [#allocation9]   ;;  %s3692_s13 = smov 4  }
 0x942   : > { %s2620_s5 = sshll.u32 %s3691_s23, 4  ;;  %s2621_s5 = int_to_ptr.vmem [resolvable:$true] %s2620_s5 }
 0x946   : > { %s2622_s7 = sshll.u32 %s4533_s0, 4  ;;  %s2623_s7 = int_to_ptr.hbm [resolvable:$true] %s2622_s7 }
 0x947   : > { %3206 = dma.vmem_to_hbm [thread:$0]  (%p3220_p2), %s2621_s5, 256, %s2623_s7, [#allocation5], %s3688_s10, %s3688_s10, %s3692_s13  }
 0x948   : > { %3654 = dma.done.wait (%p3220_p2), [#allocation5], 256  }
 0x949   : > { %3656 = vsyncadd (%p3220_p2), [#allocation5], 4294967040 }
 0x94a PF: > { %s4534_s15 = sld [smem:[#allocation14_spill]]  ;;  %s4538_s25 = smov %s3663_s26 }
 0x94b   : > { %s4535_s14 = sld [smem:[#allocation13_spill]]  ;;  %s4540_s28 = smov %s3675_s29 }
 0x94c   : > { %s4536_s27 = sld [smem:[#allocation16_spill]] }
 0x94d   : > { %s4537_s1 = sld [smem:[#allocation15_spill]] }
 0x950   : > { %s30_s30 = sadd.s32 1, %s4534_s15  }
 0x951   : > { %p27_p3 = scmp.ge.s32.totalorder %s30_s30, 4   ;;  %s4539_s26 = smov %s4535_s14 }
 0x953   : > { %s4541_s29 = smov %s4537_s1  ;;  %29 = sbr.rel (!%p27_p3) target bundleno = 17 (0x11), region = 166 }
 0x958   :  { %2639 = vsyncpa [#allocation4], 1 }
 0x959   :  { %2641 = vsyncpa [#allocation4 + $0x1], 1 }
 0x95a   :  { %2642 = vsyncpa [#allocation7], 1 }
 0x95b   :  { %2644 = vsyncpa [#allocation7 + $0x1], 1 }
 0x95c   :  { %2645 = vsyncpa [#allocation5], 1 }
 0x95d   :  { %2647 = vsyncpa [#allocation5 + $0x1], 1 }

</bundles_post_ra>
